<compile_context>
chip_gen: v7x
topology: tpu7x:2x2x1
jax: 0.10.0
libtpu: 0.0.40
codegen_flags: <defaults>
</compile_context>

<pallas_src>
import functools

import numpy as np
import jax
import jax.numpy as jnp
from jax import lax
from jax.experimental import pallas as pl
from jax.experimental.pallas import tpu as pltpu


def _loss_kernel(meta_ref, pix_ref, mdr_ref, mdc_ref, out_ref,
                 gt_buf, min_buf, *, scoring_weight, inv_np, p_pad):
    b = pl.program_id(0)

    # per-batch scalars from SMEM
    sym_flag = meta_ref[b, 0]
    sel_w = meta_ref[b, 1]
    inv_nv = meta_ref[b, 2]
    R00 = meta_ref[b, 3]; R01 = meta_ref[b, 4]; R02 = meta_ref[b, 5]
    R10 = meta_ref[b, 6]; R11 = meta_ref[b, 7]; R12 = meta_ref[b, 8]
    R20 = meta_ref[b, 9]; R21 = meta_ref[b, 10]; R22 = meta_ref[b, 11]
    T0 = meta_ref[b, 12]; T1 = meta_ref[b, 13]; T2 = meta_ref[b, 14]

    # packed per-pixel block: cols 0-3 quat, 4-6 trans, 7 score, 8 valid
    pix = pix_ref[0]                                  # (NVp, 16)
    q0 = pix[:, 0:1]; q1 = pix[:, 1:2]; q2 = pix[:, 2:3]; q3 = pix[:, 3:4]
    tx = pix[:, 4:5]; ty = pix[:, 5:6]; tz = pix[:, 6:7]
    ps = pix[:, 7:8]
    valid = pix[:, 8:9]

    # model points, row layout: rows 0-2 raw-reshaped xyz, row 3 true-point mask
    mdr = mdr_ref[0]                                  # (8, Pp)
    mx = mdr[0:1, :]; my = mdr[1:2, :]; mz = mdr[2:3, :]
    pmask = mdr[3:4, :]                               # (1, Pp)

    # quaternion normalization: rsqrt on the EUP + eps guard for padded rows
    n2 = q0 * q0 + q1 * q1 + q2 * q2 + q3 * q3
    inv_norm = lax.rsqrt(jnp.maximum(n2, 1e-12))
    q0 = q0 * inv_norm; q1 = q1 * inv_norm
    q2 = q2 * inv_norm; q3 = q3 * inv_norm

    # quaternion_matrix() — exact element ordering from the reference
    r00 = 1.0 - 2.0 * (q2 * q2 + q3 * q3)
    r01 = 2.0 * q1 * q2 - 2.0 * q0 * q3
    r02 = 2.0 * q0 * q2 + 2.0 * q1 * q3
    r10 = 2.0 * q1 * q2 + 2.0 * q3 * q0
    r11 = 1.0 - 2.0 * (q1 * q1 + q3 * q3)
    r12 = -2.0 * q0 * q1 + 2.0 * q2 * q3
    r20 = -2.0 * q0 * q2 + 2.0 * q1 * q3
    r21 = 2.0 * q0 * q1 + 2.0 * q2 * q3
    r22 = 1.0 - 2.0 * (q1 * q1 + q2 * q2)

    # predicted transformed model points, (NVp, Pp): pixel on sublanes, point on lanes
    px = r00 * mx + r01 * my + r02 * mz + tx
    py = r10 * mx + r11 * my + r12 * mz + ty
    pz = r20 * mx + r21 * my + r22 * mz + tz

    is_valid = valid > 0.5
    ps_safe = jnp.where(is_valid, ps, 1.0)

    def _finish(add_ij):                              # add_ij: (NVp, 1)
        loss_term = add_ij * ps_safe - scoring_weight * jnp.log(ps_safe)
        v_add = jnp.sum(jnp.where(is_valid, add_ij, 0.0), keepdims=True)     # (1,1)
        v_loss = jnp.sum(jnp.where(is_valid, loss_term, 0.0), keepdims=True)
        scale = inv_nv * sel_w
        out_ref[0:1, :, 0:1] = (v_add * scale).reshape(1, 1, 1)
        out_ref[0:1, :, 1:2] = (v_loss * scale).reshape(1, 1, 1)

    # ---------------- plain ADD (asymmetric classes) ----------------
    @pl.when(sym_flag <= 0.5)
    def _():
        gx = R00 * mx + R01 * my + R02 * mz + T0      # (1, Pp) gt points (rows)
        gy = R10 * mx + R11 * my + R12 * mz + T1
        gz = R20 * mx + R21 * my + R22 * mz + T2
        dx = px - gx; dy = py - gy; dz = pz - gz
        dist = jnp.sqrt(dx * dx + dy * dy + dz * dz)  # (NVp, Pp)
        add_plain = jnp.sum(dist * pmask, axis=1, keepdims=True) * inv_np
        _finish(add_plain)

    # ---------------- ADD-S (symmetric classes) ----------------
    @pl.when(sym_flag > 0.5)
    def _():
        # gt points in column layout (Pp, 1), written once to a small scratch so
        # the streaming loop can pull one gt point per step via a sublane slice.
        mdc = mdc_ref[0]                              # (Pp, 8)
        mxc = mdc[:, 0:1]; myc = mdc[:, 1:2]; mzc = mdc[:, 2:3]
        gt_buf[:, 0:1] = R00 * mxc + R01 * myc + R02 * mzc + T0
        gt_buf[:, 1:2] = R10 * mxc + R11 * myc + R12 * mzc + T1
        gt_buf[:, 2:3] = R20 * mxc + R21 * myc + R22 * mzc + T2

        min_buf[...] = jnp.full(min_buf.shape, 1e30, dtype=jnp.float32)

        # stream gt points: running elementwise min over the (NVp, Pp) tile.
        # Padded gt points replicate point 0, so they never change the min.
        @pl.loop(0, p_pad)
        def _(j):
            g = gt_buf[pl.ds(j, 1), :]                # (1, 8)
            dx = px - g[:, 0:1]
            dy = py - g[:, 1:2]
            dz = pz - g[:, 2:3]
            d2 = dx * dx + dy * dy + dz * dz
            min_buf[...] = jnp.minimum(min_buf[...], d2)

        dist = jnp.sqrt(min_buf[...])                 # (NVp, Pp)
        add_s = jnp.sum(dist * pmask, axis=1, keepdims=True) * inv_np
        _finish(add_s)


def _run_pallas_loss(meta, pix, mdr, mdc, scoring_weight, inv_np):
    bs, NVp, _ = pix.shape
    Pp = mdr.shape[2]
    kernel = functools.partial(
        _loss_kernel,
        scoring_weight=float(scoring_weight),
        inv_np=float(inv_np),
        p_pad=int(Pp))

    # explicit scoped-VMEM budget: double-buffered blocks + scratch + headroom
    # for the live (NVp, Pp) elementwise temporaries.  Bounded regardless of P.
    est_bytes = 4 * (2 * (NVp * 16 + 8 * Pp + Pp * 8 + 2)
                     + Pp * 8 + NVp * Pp
                     + 16 * NVp * Pp)
    vmem_limit = int(min(48 * 2 ** 20, max(4 * 2 ** 20, 2 * est_bytes)))

    out = pl.pallas_call(
        kernel,
        grid=(bs,),
        in_specs=[
            pl.BlockSpec(memory_space=pltpu.MemorySpace.SMEM),   # meta (bs, 16)
            pl.BlockSpec((1, NVp, 16), lambda i: (i, 0, 0)),     # packed pixels
            pl.BlockSpec((1, 8, Pp), lambda i: (i, 0, 0)),       # model pts (rows)
            pl.BlockSpec((1, Pp, 8), lambda i: (i, 0, 0)),       # model pts (cols)
        ],
        out_specs=pl.BlockSpec((1, 1, 2), lambda i: (i, 0, 0)),
        out_shape=jax.ShapeDtypeStruct((bs, 1, 2), jnp.float32),
        scratch_shapes=[
            pltpu.VMEM((Pp, 8), jnp.float32),      # gt points (column layout)
            pltpu.VMEM((NVp, Pp), jnp.float32),    # running NN min
        ],
        compiler_params=pltpu.CompilerParams(
            dimension_semantics=("parallel",),     # batch items are independent
            vmem_limit_bytes=vmem_limit),
    )(meta, pix, mdr, mdc)
    return out[:, 0, 0], out[:, 0, 1]


def es6d_get_loss(preds, mask, gt_r, gt_t, cls_ids, model_xyz,
                  sym_list=(), scoring_weight=0.01, loss_type='ADD',
                  train=True, step=20):
    """JAX/Pallas equivalent of models/ES6D.py::get_loss.forward."""
    select_id = set(range(1, 31))

    pred_r = np.asarray(preds['pred_r'], np.float32)
    pred_t = np.asarray(preds['pred_t'], np.float32)
    pred_s = np.asarray(preds['pred_s'], np.float32)
    mask = np.asarray(mask, np.float32)
    gt_r = np.asarray(gt_r, np.float32)
    gt_t = np.asarray(gt_t, np.float32)
    cls_ids = np.asarray(cls_ids).reshape(-1).astype(np.int64)
    model_xyz = np.asarray(model_xyz, np.float32)

    bs, _, h, w = pred_r.shape
    pred_r = pred_r.reshape(bs, 4, h * w)
    pred_t = pred_t.reshape(bs, 3, h * w)
    pred_s = pred_s.reshape(bs, h * w)

    # F.interpolate(mask, size=(h, w)) — nearest, then squeeze channel dim
    H, W = mask.shape[2], mask.shape[3]
    ri = (np.arange(h) * H) // h
    ci = (np.arange(w) * W) // w
    mask_hw = mask[:, 0][:, ri][:, :, ci].reshape(bs, h * w)

    P = model_xyz.shape[1]
    NV_max = max(20, (h * w) // step, 1)
    NVp = int(((NV_max + 7) // 8) * 8)            # NV lives on sublanes -> x8
    Pp = int(((P + 127) // 128) * 128)            # P lives on lanes    -> x128

    meta = np.zeros((bs, 16), np.float32)
    pix = np.zeros((bs, NVp, 16), np.float32)
    pix[:, :, 7] = 1.0                            # padded scores -> log() safe
    mdr = np.zeros((bs, 8, Pp), np.float32)       # rows: x, y, z, point-mask
    mdc = np.zeros((bs, Pp, 8), np.float32)       # cols: x, y, z

    use_add = (loss_type == 'ADD') or (not train)

    for i in range(bs):
        # raw reshape (P,3) -> (3,P), exactly like torch .view(1, 3, num_points)
        m3p = model_xyz[i].reshape(3, P)
        if Pp > P:
            m3p_pad = np.concatenate(
                [m3p, np.repeat(m3p[:, :1], Pp - P, axis=1)], axis=1)
        else:
            m3p_pad = m3p
        mdr[i, 0:3, :] = m3p_pad
        mdr[i, 3, :P] = 1.0
        mdc[i, :, 0:3] = m3p_pad.T
        meta[i, 3:12] = gt_r[i].reshape(9)
        meta[i, 12:15] = gt_t[i].reshape(3)

        if not use_add:
            continue
        vp = np.nonzero(mask_hw[i])[0]
        num_valid = vp.shape[0]
        if num_valid < 1:
            continue
        if num_valid > 20:
            sel = [j * step for j in range(int(num_valid / step))]
            vp = vp[sel]
            num_valid = vp.shape[0]
        n = num_valid
        pix[i, :n, 0:4] = pred_r[i][:, vp].T
        pix[i, :n, 4:7] = pred_t[i][:, vp].T
        pix[i, :n, 7] = pred_s[i][vp]
        pix[i, :n, 8] = 1.0
        meta[i, 0] = 1.0 if int(cls_ids[i]) in set(sym_list) else 0.0
        if train:
            meta[i, 1] = 1.0 if (int(cls_ids[i]) + 1) in select_id else 0.0
        else:
            meta[i, 1] = 1.0
        meta[i, 2] = 1.0 / n

    sub_value, sub_loss_value = _run_pallas_loss(
        jnp.asarray(meta), jnp.asarray(pix), jnp.asarray(mdr), jnp.asarray(mdc),
        scoring_weight, 1.0 / P)

    gadd = jnp.mean(sub_value)
    gadd_loss = jnp.mean(sub_loss_value)
    if train:
        loss_dict = {'{}_loss'.format(loss_type): float(gadd_loss),
                     '{}'.format(loss_type): float(gadd)}
        gadd_loss = jnp.where(jnp.isinf(gadd_loss), jnp.zeros_like(gadd_loss), gadd_loss)
        gadd_loss = jnp.where(jnp.isnan(gadd_loss), jnp.zeros_like(gadd_loss), gadd_loss)
        return gadd_loss, loss_dict
    else:
        loss_dict = {'add_loss': float(gadd_loss), 'add': float(gadd)}
        return gadd_loss, loss_dict


if __name__ == "__main__":
    key = jax.random.PRNGKey(0)
    bs, h, w, P = 2, 16, 16, 64
    ks = jax.random.split(key, 8)

    pred_r = jax.random.normal(ks[0], (bs, 4, h, w), jnp.float32)
    pred_t = 0.1 * jax.random.normal(ks[1], (bs, 3, h, w), jnp.float32)
    pred_s = jax.random.uniform(ks[2], (bs, 1, h, w), jnp.float32, 0.1, 1.0)
    mask = (jax.random.uniform(ks[3], (bs, 1, h, w), jnp.float32) > 0.3).astype(jnp.float32)

    # deterministic ground-truth rotations from random unit quaternions
    q = np.asarray(jax.random.normal(ks[4], (bs, 4), jnp.float32))
    q = q / np.linalg.norm(q, axis=1, keepdims=True)

    def quat_to_R(qv):
        w_, x, y, z = qv
        return np.array(
            [[1 - 2 * (y * y + z * z), 2 * (x * y - w_ * z), 2 * (x * z + w_ * y)],
             [2 * (x * y + w_ * z), 1 - 2 * (x * x + z * z), 2 * (y * z - w_ * x)],
             [2 * (x * z - w_ * y), 2 * (y * z + w_ * x), 1 - 2 * (x * x + y * y)]],
            np.float32)

    gt_r = np.stack([quat_to_R(q[i]) for i in range(bs)])
    gt_t = 0.1 * np.asarray(jax.random.normal(ks[5], (bs, 3), jnp.float32))
    cls_ids = np.array([2, 5], np.int64).reshape(bs, 1)   # one asym + one sym class
    model_xyz = np.asarray(
        jax.random.uniform(ks[6], (bs, P, 3), jnp.float32, -0.05, 0.05))

    preds = {'pred_r': pred_r, 'pred_t': pred_t, 'pred_s': pred_s}

    loss, loss_dict = es6d_get_loss(
        preds, mask, gt_r, gt_t, cls_ids, model_xyz,
        sym_list=(5,), scoring_weight=0.01, loss_type='ADD', train=True, step=20)
    jax.block_until_ready(loss)
    print("KERNEL_OK")
</pallas_src>

<mosaic_0001>
module attributes {stable_mosaic.version = 11 : i64} {
  func.func @_loss_kernel(%arg0: i32, %arg1: memref<2x16xf32, #tpu.memory_space<smem>>, %arg2: memref<1x24x16xf32, #tpu.memory_space<vmem>>, %arg3: memref<1x8x128xf32, #tpu.memory_space<vmem>>, %arg4: memref<1x128x8xf32, #tpu.memory_space<vmem>>, %arg5: memref<1x1x2xf32, #tpu.memory_space<vmem>>, %arg6: memref<128x8xf32, #tpu.memory_space<vmem>>, %arg7: memref<24x128xf32, #tpu.memory_space<vmem>>) attributes {dimension_semantics = [#tpu.dimension_semantics<parallel>], iteration_bounds = array<i64: 2>, scalar_prefetch = 0 : i64, scratch_operands = 2 : i64, tpu.core_type = #tpu.core_type<tc>, window_params = [{transform_indices = @transform_0, window_bounds = array<i64: 2, 16>}, {transform_indices = @transform_1, window_bounds = array<i64: 1, 24, 16>}, {transform_indices = @transform_2, window_bounds = array<i64: 1, 8, 128>}, {transform_indices = @transform_3, window_bounds = array<i64: 1, 128, 8>}, {transform_indices = @transform_4, window_bounds = array<i64: 1, 1, 2>}]} {
    %0 = arith.index_cast %arg0 : i32 to index
    %c0 = arith.constant 0 : index
    %1 = memref.load %arg1[%0, %c0] : memref<2x16xf32, #tpu.memory_space<smem>>
    %2 = arith.index_cast %arg0 : i32 to index
    %c1 = arith.constant 1 : index
    %3 = memref.load %arg1[%2, %c1] : memref<2x16xf32, #tpu.memory_space<smem>>
    %4 = arith.index_cast %arg0 : i32 to index
    %c2 = arith.constant 2 : index
    %5 = memref.load %arg1[%4, %c2] : memref<2x16xf32, #tpu.memory_space<smem>>
    %6 = arith.index_cast %arg0 : i32 to index
    %c3 = arith.constant 3 : index
    %7 = memref.load %arg1[%6, %c3] : memref<2x16xf32, #tpu.memory_space<smem>>
    %8 = arith.index_cast %arg0 : i32 to index
    %c4 = arith.constant 4 : index
    %9 = memref.load %arg1[%8, %c4] : memref<2x16xf32, #tpu.memory_space<smem>>
    %10 = arith.index_cast %arg0 : i32 to index
    %c5 = arith.constant 5 : index
    %11 = memref.load %arg1[%10, %c5] : memref<2x16xf32, #tpu.memory_space<smem>>
    %12 = arith.index_cast %arg0 : i32 to index
    %c6 = arith.constant 6 : index
    %13 = memref.load %arg1[%12, %c6] : memref<2x16xf32, #tpu.memory_space<smem>>
    %14 = arith.index_cast %arg0 : i32 to index
    %c7 = arith.constant 7 : index
    %15 = memref.load %arg1[%14, %c7] : memref<2x16xf32, #tpu.memory_space<smem>>
    %16 = arith.index_cast %arg0 : i32 to index
    %c8 = arith.constant 8 : index
    %17 = memref.load %arg1[%16, %c8] : memref<2x16xf32, #tpu.memory_space<smem>>
    %18 = arith.index_cast %arg0 : i32 to index
    %c9 = arith.constant 9 : index
    %19 = memref.load %arg1[%18, %c9] : memref<2x16xf32, #tpu.memory_space<smem>>
    %20 = arith.index_cast %arg0 : i32 to index
    %c10 = arith.constant 10 : index
    %21 = memref.load %arg1[%20, %c10] : memref<2x16xf32, #tpu.memory_space<smem>>
    %22 = arith.index_cast %arg0 : i32 to index
    %c11 = arith.constant 11 : index
    %23 = memref.load %arg1[%22, %c11] : memref<2x16xf32, #tpu.memory_space<smem>>
    %24 = arith.index_cast %arg0 : i32 to index
    %c12 = arith.constant 12 : index
    %25 = memref.load %arg1[%24, %c12] : memref<2x16xf32, #tpu.memory_space<smem>>
    %26 = arith.index_cast %arg0 : i32 to index
    %c13 = arith.constant 13 : index
    %27 = memref.load %arg1[%26, %c13] : memref<2x16xf32, #tpu.memory_space<smem>>
    %28 = arith.index_cast %arg0 : i32 to index
    %c14 = arith.constant 14 : index
    %29 = memref.load %arg1[%28, %c14] : memref<2x16xf32, #tpu.memory_space<smem>>
    %c0_0 = arith.constant 0 : index
    %c0_1 = arith.constant 0 : index
    %c0_2 = arith.constant 0 : index
    %30 = vector.load %arg2[%c0_0, %c0_1, %c0_2] : memref<1x24x16xf32, #tpu.memory_space<vmem>>, vector<1x24x16xf32>
    %31 = vector.shape_cast %30 : vector<1x24x16xf32> to vector<24x16xf32>
    %32 = vector.extract_strided_slice %31 {offsets = [0, 0], sizes = [24, 1], strides = [1, 1]} : vector<24x16xf32> to vector<24x1xf32>
    %33 = vector.extract_strided_slice %31 {offsets = [0, 1], sizes = [24, 1], strides = [1, 1]} : vector<24x16xf32> to vector<24x1xf32>
    %34 = vector.extract_strided_slice %31 {offsets = [0, 2], sizes = [24, 1], strides = [1, 1]} : vector<24x16xf32> to vector<24x1xf32>
    %35 = vector.extract_strided_slice %31 {offsets = [0, 3], sizes = [24, 1], strides = [1, 1]} : vector<24x16xf32> to vector<24x1xf32>
    %36 = vector.extract_strided_slice %31 {offsets = [0, 4], sizes = [24, 1], strides = [1, 1]} : vector<24x16xf32> to vector<24x1xf32>
    %37 = vector.extract_strided_slice %31 {offsets = [0, 5], sizes = [24, 1], strides = [1, 1]} : vector<24x16xf32> to vector<24x1xf32>
    %38 = vector.extract_strided_slice %31 {offsets = [0, 6], sizes = [24, 1], strides = [1, 1]} : vector<24x16xf32> to vector<24x1xf32>
    %39 = vector.extract_strided_slice %31 {offsets = [0, 7], sizes = [24, 1], strides = [1, 1]} : vector<24x16xf32> to vector<24x1xf32>
    %40 = vector.extract_strided_slice %31 {offsets = [0, 8], sizes = [24, 1], strides = [1, 1]} : vector<24x16xf32> to vector<24x1xf32>
    %c0_3 = arith.constant 0 : index
    %c0_4 = arith.constant 0 : index
    %c0_5 = arith.constant 0 : index
    %41 = vector.load %arg3[%c0_3, %c0_4, %c0_5] : memref<1x8x128xf32, #tpu.memory_space<vmem>>, vector<1x8x128xf32>
    %42 = vector.shape_cast %41 : vector<1x8x128xf32> to vector<8x128xf32>
    %43 = vector.extract_strided_slice %42 {offsets = [0, 0], sizes = [1, 128], strides = [1, 1]} : vector<8x128xf32> to vector<1x128xf32>
    %44 = vector.extract_strided_slice %42 {offsets = [1, 0], sizes = [1, 128], strides = [1, 1]} : vector<8x128xf32> to vector<1x128xf32>
    %45 = vector.extract_strided_slice %42 {offsets = [2, 0], sizes = [1, 128], strides = [1, 1]} : vector<8x128xf32> to vector<1x128xf32>
    %46 = vector.extract_strided_slice %42 {offsets = [3, 0], sizes = [1, 128], strides = [1, 1]} : vector<8x128xf32> to vector<1x128xf32>
    %47 = arith.mulf %32, %32 : vector<24x1xf32>
    %48 = arith.mulf %33, %33 : vector<24x1xf32>
    %49 = arith.addf %47, %48 : vector<24x1xf32>
    %50 = arith.mulf %34, %34 : vector<24x1xf32>
    %51 = arith.addf %49, %50 : vector<24x1xf32>
    %52 = arith.mulf %35, %35 : vector<24x1xf32>
    %53 = arith.addf %51, %52 : vector<24x1xf32>
    %cst = arith.constant 9.99999996E-13 : f32
    %54 = vector.broadcast %cst : f32 to vector<24x1xf32>
    %55 = arith.maximumf %53, %54 : vector<24x1xf32>
    %56 = math.rsqrt %55 : vector<24x1xf32>
    %57 = arith.mulf %32, %56 : vector<24x1xf32>
    %58 = arith.mulf %33, %56 : vector<24x1xf32>
    %59 = arith.mulf %34, %56 : vector<24x1xf32>
    %60 = arith.mulf %35, %56 : vector<24x1xf32>
    %61 = arith.mulf %59, %59 : vector<24x1xf32>
    %62 = arith.mulf %60, %60 : vector<24x1xf32>
    %63 = arith.addf %61, %62 : vector<24x1xf32>
    %cst_6 = arith.constant 2.000000e+00 : f32
    %64 = vector.broadcast %cst_6 : f32 to vector<24x1xf32>
    %65 = arith.mulf %64, %63 : vector<24x1xf32>
    %cst_7 = arith.constant 1.000000e+00 : f32
    %66 = vector.broadcast %cst_7 : f32 to vector<24x1xf32>
    %67 = arith.subf %66, %65 : vector<24x1xf32>
    %cst_8 = arith.constant 2.000000e+00 : f32
    %68 = vector.broadcast %cst_8 : f32 to vector<24x1xf32>
    %69 = arith.mulf %68, %58 : vector<24x1xf32>
    %70 = arith.mulf %69, %59 : vector<24x1xf32>
    %cst_9 = arith.constant 2.000000e+00 : f32
    %71 = vector.broadcast %cst_9 : f32 to vector<24x1xf32>
    %72 = arith.mulf %71, %57 : vector<24x1xf32>
    %73 = arith.mulf %72, %60 : vector<24x1xf32>
    %74 = arith.subf %70, %73 : vector<24x1xf32>
    %cst_10 = arith.constant 2.000000e+00 : f32
    %75 = vector.broadcast %cst_10 : f32 to vector<24x1xf32>
    %76 = arith.mulf %75, %57 : vector<24x1xf32>
    %77 = arith.mulf %76, %59 : vector<24x1xf32>
    %cst_11 = arith.constant 2.000000e+00 : f32
    %78 = vector.broadcast %cst_11 : f32 to vector<24x1xf32>
    %79 = arith.mulf %78, %58 : vector<24x1xf32>
    %80 = arith.mulf %79, %60 : vector<24x1xf32>
    %81 = arith.addf %77, %80 : vector<24x1xf32>
    %cst_12 = arith.constant 2.000000e+00 : f32
    %82 = vector.broadcast %cst_12 : f32 to vector<24x1xf32>
    %83 = arith.mulf %82, %58 : vector<24x1xf32>
    %84 = arith.mulf %83, %59 : vector<24x1xf32>
    %cst_13 = arith.constant 2.000000e+00 : f32
    %85 = vector.broadcast %cst_13 : f32 to vector<24x1xf32>
    %86 = arith.mulf %85, %60 : vector<24x1xf32>
    %87 = arith.mulf %86, %57 : vector<24x1xf32>
    %88 = arith.addf %84, %87 : vector<24x1xf32>
    %89 = arith.mulf %58, %58 : vector<24x1xf32>
    %90 = arith.mulf %60, %60 : vector<24x1xf32>
    %91 = arith.addf %89, %90 : vector<24x1xf32>
    %cst_14 = arith.constant 2.000000e+00 : f32
    %92 = vector.broadcast %cst_14 : f32 to vector<24x1xf32>
    %93 = arith.mulf %92, %91 : vector<24x1xf32>
    %cst_15 = arith.constant 1.000000e+00 : f32
    %94 = vector.broadcast %cst_15 : f32 to vector<24x1xf32>
    %95 = arith.subf %94, %93 : vector<24x1xf32>
    %cst_16 = arith.constant -2.000000e+00 : f32
    %96 = vector.broadcast %cst_16 : f32 to vector<24x1xf32>
    %97 = arith.mulf %96, %57 : vector<24x1xf32>
    %98 = arith.mulf %97, %58 : vector<24x1xf32>
    %cst_17 = arith.constant 2.000000e+00 : f32
    %99 = vector.broadcast %cst_17 : f32 to vector<24x1xf32>
    %100 = arith.mulf %99, %59 : vector<24x1xf32>
    %101 = arith.mulf %100, %60 : vector<24x1xf32>
    %102 = arith.addf %98, %101 : vector<24x1xf32>
    %cst_18 = arith.constant -2.000000e+00 : f32
    %103 = vector.broadcast %cst_18 : f32 to vector<24x1xf32>
    %104 = arith.mulf %103, %57 : vector<24x1xf32>
    %105 = arith.mulf %104, %59 : vector<24x1xf32>
    %cst_19 = arith.constant 2.000000e+00 : f32
    %106 = vector.broadcast %cst_19 : f32 to vector<24x1xf32>
    %107 = arith.mulf %106, %58 : vector<24x1xf32>
    %108 = arith.mulf %107, %60 : vector<24x1xf32>
    %109 = arith.addf %105, %108 : vector<24x1xf32>
    %cst_20 = arith.constant 2.000000e+00 : f32
    %110 = vector.broadcast %cst_20 : f32 to vector<24x1xf32>
    %111 = arith.mulf %110, %57 : vector<24x1xf32>
    %112 = arith.mulf %111, %58 : vector<24x1xf32>
    %cst_21 = arith.constant 2.000000e+00 : f32
    %113 = vector.broadcast %cst_21 : f32 to vector<24x1xf32>
    %114 = arith.mulf %113, %59 : vector<24x1xf32>
    %115 = arith.mulf %114, %60 : vector<24x1xf32>
    %116 = arith.addf %112, %115 : vector<24x1xf32>
    %117 = arith.mulf %58, %58 : vector<24x1xf32>
    %118 = arith.mulf %59, %59 : vector<24x1xf32>
    %119 = arith.addf %117, %118 : vector<24x1xf32>
    %cst_22 = arith.constant 2.000000e+00 : f32
    %120 = vector.broadcast %cst_22 : f32 to vector<24x1xf32>
    %121 = arith.mulf %120, %119 : vector<24x1xf32>
    %cst_23 = arith.constant 1.000000e+00 : f32
    %122 = vector.broadcast %cst_23 : f32 to vector<24x1xf32>
    %123 = arith.subf %122, %121 : vector<24x1xf32>
    %124 = vector.broadcast %67 : vector<24x1xf32> to vector<24x128xf32>
    %125 = vector.broadcast %43 : vector<1x128xf32> to vector<24x128xf32>
    %126 = arith.mulf %124, %125 : vector<24x128xf32>
    %127 = vector.broadcast %74 : vector<24x1xf32> to vector<24x128xf32>
    %128 = vector.broadcast %44 : vector<1x128xf32> to vector<24x128xf32>
    %129 = arith.mulf %127, %128 : vector<24x128xf32>
    %130 = arith.addf %126, %129 : vector<24x128xf32>
    %131 = vector.broadcast %81 : vector<24x1xf32> to vector<24x128xf32>
    %132 = vector.broadcast %45 : vector<1x128xf32> to vector<24x128xf32>
    %133 = arith.mulf %131, %132 : vector<24x128xf32>
    %134 = arith.addf %130, %133 : vector<24x128xf32>
    %135 = vector.broadcast %36 : vector<24x1xf32> to vector<24x128xf32>
    %136 = arith.addf %134, %135 : vector<24x128xf32>
    %137 = vector.broadcast %88 : vector<24x1xf32> to vector<24x128xf32>
    %138 = vector.broadcast %43 : vector<1x128xf32> to vector<24x128xf32>
    %139 = arith.mulf %137, %138 : vector<24x128xf32>
    %140 = vector.broadcast %95 : vector<24x1xf32> to vector<24x128xf32>
    %141 = vector.broadcast %44 : vector<1x128xf32> to vector<24x128xf32>
    %142 = arith.mulf %140, %141 : vector<24x128xf32>
    %143 = arith.addf %139, %142 : vector<24x128xf32>
    %144 = vector.broadcast %102 : vector<24x1xf32> to vector<24x128xf32>
    %145 = vector.broadcast %45 : vector<1x128xf32> to vector<24x128xf32>
    %146 = arith.mulf %144, %145 : vector<24x128xf32>
    %147 = arith.addf %143, %146 : vector<24x128xf32>
    %148 = vector.broadcast %37 : vector<24x1xf32> to vector<24x128xf32>
    %149 = arith.addf %147, %148 : vector<24x128xf32>
    %150 = vector.broadcast %109 : vector<24x1xf32> to vector<24x128xf32>
    %151 = vector.broadcast %43 : vector<1x128xf32> to vector<24x128xf32>
    %152 = arith.mulf %150, %151 : vector<24x128xf32>
    %153 = vector.broadcast %116 : vector<24x1xf32> to vector<24x128xf32>
    %154 = vector.broadcast %44 : vector<1x128xf32> to vector<24x128xf32>
    %155 = arith.mulf %153, %154 : vector<24x128xf32>
    %156 = arith.addf %152, %155 : vector<24x128xf32>
    %157 = vector.broadcast %123 : vector<24x1xf32> to vector<24x128xf32>
    %158 = vector.broadcast %45 : vector<1x128xf32> to vector<24x128xf32>
    %159 = arith.mulf %157, %158 : vector<24x128xf32>
    %160 = arith.addf %156, %159 : vector<24x128xf32>
    %161 = vector.broadcast %38 : vector<24x1xf32> to vector<24x128xf32>
    %162 = arith.addf %160, %161 : vector<24x128xf32>
    %cst_24 = arith.constant 5.000000e-01 : f32
    %163 = vector.broadcast %cst_24 : f32 to vector<24x1xf32>
    %164 = arith.cmpf ogt, %40, %163 : vector<24x1xf32>
    %cst_25 = arith.constant 1.000000e+00 : f32
    %165 = vector.broadcast %cst_25 : f32 to vector<24x1xf32>
    %166 = arith.select %164, %39, %165 : vector<24x1xi1>, vector<24x1xf32>
    %cst_26 = arith.constant 5.000000e-01 : f32
    %167 = arith.cmpf ole, %1, %cst_26 : f32
    %168 = arith.extui %167 : i1 to i32
    %c0_i32 = arith.constant 0 : i32
    %169 = arith.cmpi ne, %168, %c0_i32 : i32
    scf.if %169 {
      %173 = vector.broadcast %7 : f32 to vector<1x128xf32>
      %174 = arith.mulf %173, %43 : vector<1x128xf32>
      %175 = vector.broadcast %9 : f32 to vector<1x128xf32>
      %176 = arith.mulf %175, %44 : vector<1x128xf32>
      %177 = arith.addf %174, %176 : vector<1x128xf32>
      %178 = vector.broadcast %11 : f32 to vector<1x128xf32>
      %179 = arith.mulf %178, %45 : vector<1x128xf32>
      %180 = arith.addf %177, %179 : vector<1x128xf32>
      %181 = vector.broadcast %25 : f32 to vector<1x128xf32>
      %182 = arith.addf %180, %181 : vector<1x128xf32>
      %183 = vector.broadcast %13 : f32 to vector<1x128xf32>
      %184 = arith.mulf %183, %43 : vector<1x128xf32>
      %185 = vector.broadcast %15 : f32 to vector<1x128xf32>
      %186 = arith.mulf %185, %44 : vector<1x128xf32>
      %187 = arith.addf %184, %186 : vector<1x128xf32>
      %188 = vector.broadcast %17 : f32 to vector<1x128xf32>
      %189 = arith.mulf %188, %45 : vector<1x128xf32>
      %190 = arith.addf %187, %189 : vector<1x128xf32>
      %191 = vector.broadcast %27 : f32 to vector<1x128xf32>
      %192 = arith.addf %190, %191 : vector<1x128xf32>
      %193 = vector.broadcast %19 : f32 to vector<1x128xf32>
      %194 = arith.mulf %193, %43 : vector<1x128xf32>
      %195 = vector.broadcast %21 : f32 to vector<1x128xf32>
      %196 = arith.mulf %195, %44 : vector<1x128xf32>
      %197 = arith.addf %194, %196 : vector<1x128xf32>
      %198 = vector.broadcast %23 : f32 to vector<1x128xf32>
      %199 = arith.mulf %198, %45 : vector<1x128xf32>
      %200 = arith.addf %197, %199 : vector<1x128xf32>
      %201 = vector.broadcast %29 : f32 to vector<1x128xf32>
      %202 = arith.addf %200, %201 : vector<1x128xf32>
      %203 = vector.broadcast %182 : vector<1x128xf32> to vector<24x128xf32>
      %204 = arith.subf %136, %203 : vector<24x128xf32>
      %205 = vector.broadcast %192 : vector<1x128xf32> to vector<24x128xf32>
      %206 = arith.subf %149, %205 : vector<24x128xf32>
      %207 = vector.broadcast %202 : vector<1x128xf32> to vector<24x128xf32>
      %208 = arith.subf %162, %207 : vector<24x128xf32>
      %209 = arith.mulf %204, %204 : vector<24x128xf32>
      %210 = arith.mulf %206, %206 : vector<24x128xf32>
      %211 = arith.addf %209, %210 : vector<24x128xf32>
      %212 = arith.mulf %208, %208 : vector<24x128xf32>
      %213 = arith.addf %211, %212 : vector<24x128xf32>
      %214 = math.sqrt %213 : vector<24x128xf32>
      %215 = vector.broadcast %46 : vector<1x128xf32> to vector<24x128xf32>
      %216 = arith.mulf %214, %215 : vector<24x128xf32>
      %cst_29 = arith.constant dense<0.000000e+00> : vector<24xf32>
      %217 = vector.multi_reduction <add>, %216, %cst_29 [1] : vector<24x128xf32> to vector<24xf32>
      %218 = vector.shape_cast %217 : vector<24xf32> to vector<24x1xf32>
      %cst_30 = arith.constant 1.562500e-02 : f32
      %219 = vector.broadcast %cst_30 : f32 to vector<24x1xf32>
      %220 = arith.mulf %218, %219 : vector<24x1xf32>
      %221 = arith.mulf %220, %166 : vector<24x1xf32>
      %222 = math.log %166 : vector<24x1xf32>
      %cst_31 = arith.constant 0.00999999977 : f32
      %223 = vector.broadcast %cst_31 : f32 to vector<24x1xf32>
      %224 = arith.mulf %223, %222 : vector<24x1xf32>
      %225 = arith.subf %221, %224 : vector<24x1xf32>
      %cst_32 = arith.constant 0.000000e+00 : f32
      %226 = vector.broadcast %cst_32 : f32 to vector<24x1xf32>
      %227 = arith.select %164, %220, %226 : vector<24x1xi1>, vector<24x1xf32>
      %228 = vector.shape_cast %227 : vector<24x1xf32> to vector<1x24x1xf32>
      %cst_33 = arith.constant dense<0.000000e+00> : vector<1xf32>
      %229 = vector.multi_reduction <add>, %228, %cst_33 [1, 2] : vector<1x24x1xf32> to vector<1xf32>
      %230 = vector.shape_cast %229 : vector<1xf32> to vector<1x1x1xf32>
      %231 = vector.extract %230[0, 0, 0] : f32 from vector<1x1x1xf32>
      %232 = vector.broadcast %231 : f32 to vector<1x1xf32>
      %cst_34 = arith.constant 0.000000e+00 : f32
      %233 = vector.broadcast %cst_34 : f32 to vector<24x1xf32>
      %234 = arith.select %164, %225, %233 : vector<24x1xi1>, vector<24x1xf32>
      %235 = vector.shape_cast %234 : vector<24x1xf32> to vector<1x24x1xf32>
      %cst_35 = arith.constant dense<0.000000e+00> : vector<1xf32>
      %236 = vector.multi_reduction <add>, %235, %cst_35 [1, 2] : vector<1x24x1xf32> to vector<1xf32>
      %237 = vector.shape_cast %236 : vector<1xf32> to vector<1x1x1xf32>
      %238 = vector.extract %237[0, 0, 0] : f32 from vector<1x1x1xf32>
      %239 = vector.broadcast %238 : f32 to vector<1x1xf32>
      %240 = arith.mulf %5, %3 : f32
      %241 = vector.broadcast %240 : f32 to vector<1x1xf32>
      %242 = arith.mulf %232, %241 : vector<1x1xf32>
      %243 = vector.shape_cast %242 : vector<1x1xf32> to vector<1x1x1xf32>
      %c0_36 = arith.constant 0 : index
      %c0_37 = arith.constant 0 : index
      %c0_38 = arith.constant 0 : index
      %244 = vector.load %arg5[%c0_36, %c0_37, %c0_38] : memref<1x1x2xf32, #tpu.memory_space<vmem>>, vector<1x1x1xf32>
      tpu.vector_store %arg5[%c0_36, %c0_37, %c0_38], %243 {strides = array<i32>} : memref<1x1x2xf32, #tpu.memory_space<vmem>>, vector<1x1x1xf32>,
      %245 = vector.broadcast %240 : f32 to vector<1x1xf32>
      %246 = arith.mulf %239, %245 : vector<1x1xf32>
      %247 = vector.shape_cast %246 : vector<1x1xf32> to vector<1x1x1xf32>
      %c0_39 = arith.constant 0 : index
      %c0_40 = arith.constant 0 : index
      %c1_41 = arith.constant 1 : index
      %248 = vector.load %arg5[%c0_39, %c0_40, %c1_41] : memref<1x1x2xf32, #tpu.memory_space<vmem>>, vector<1x1x1xf32>
      tpu.vector_store %arg5[%c0_39, %c0_40, %c1_41], %247 {strides = array<i32>} : memref<1x1x2xf32, #tpu.memory_space<vmem>>, vector<1x1x1xf32>,
    } else {
    }
    %cst_27 = arith.constant 5.000000e-01 : f32
    %170 = arith.cmpf ogt, %1, %cst_27 : f32
    %171 = arith.extui %170 : i1 to i32
    %c0_i32_28 = arith.constant 0 : i32
    %172 = arith.cmpi ne, %171, %c0_i32_28 : i32
    scf.if %172 {
      %c0_29 = arith.constant 0 : index
      %c0_30 = arith.constant 0 : index
      %c0_31 = arith.constant 0 : index
      %173 = vector.load %arg4[%c0_29, %c0_30, %c0_31] : memref<1x128x8xf32, #tpu.memory_space<vmem>>, vector<1x128x8xf32>
      %174 = vector.shape_cast %173 : vector<1x128x8xf32> to vector<128x8xf32>
      %175 = vector.extract_strided_slice %174 {offsets = [0, 0], sizes = [128, 1], strides = [1, 1]} : vector<128x8xf32> to vector<128x1xf32>
      %176 = vector.extract_strided_slice %174 {offsets = [0, 1], sizes = [128, 1], strides = [1, 1]} : vector<128x8xf32> to vector<128x1xf32>
      %177 = vector.extract_strided_slice %174 {offsets = [0, 2], sizes = [128, 1], strides = [1, 1]} : vector<128x8xf32> to vector<128x1xf32>
      %178 = vector.broadcast %7 : f32 to vector<128x1xf32>
      %179 = arith.mulf %178, %175 : vector<128x1xf32>
      %180 = vector.broadcast %9 : f32 to vector<128x1xf32>
      %181 = arith.mulf %180, %176 : vector<128x1xf32>
      %182 = arith.addf %179, %181 : vector<128x1xf32>
      %183 = vector.broadcast %11 : f32 to vector<128x1xf32>
      %184 = arith.mulf %183, %177 : vector<128x1xf32>
      %185 = arith.addf %182, %184 : vector<128x1xf32>
      %186 = vector.broadcast %25 : f32 to vector<128x1xf32>
      %187 = arith.addf %185, %186 : vector<128x1xf32>
      %c0_32 = arith.constant 0 : index
      %c0_33 = arith.constant 0 : index
      %188 = vector.load %arg6[%c0_32, %c0_33] : memref<128x8xf32, #tpu.memory_space<vmem>>, vector<128x1xf32>
      tpu.vector_store %arg6[%c0_32, %c0_33], %187 {strides = array<i32>} : memref<128x8xf32, #tpu.memory_space<vmem>>, vector<128x1xf32>,
      %189 = vector.broadcast %13 : f32 to vector<128x1xf32>
      %190 = arith.mulf %189, %175 : vector<128x1xf32>
      %191 = vector.broadcast %15 : f32 to vector<128x1xf32>
      %192 = arith.mulf %191, %176 : vector<128x1xf32>
      %193 = arith.addf %190, %192 : vector<128x1xf32>
      %194 = vector.broadcast %17 : f32 to vector<128x1xf32>
      %195 = arith.mulf %194, %177 : vector<128x1xf32>
      %196 = arith.addf %193, %195 : vector<128x1xf32>
      %197 = vector.broadcast %27 : f32 to vector<128x1xf32>
      %198 = arith.addf %196, %197 : vector<128x1xf32>
      %c0_34 = arith.constant 0 : index
      %c1_35 = arith.constant 1 : index
      %199 = vector.load %arg6[%c0_34, %c1_35] : memref<128x8xf32, #tpu.memory_space<vmem>>, vector<128x1xf32>
      tpu.vector_store %arg6[%c0_34, %c1_35], %198 {strides = array<i32>} : memref<128x8xf32, #tpu.memory_space<vmem>>, vector<128x1xf32>,
      %200 = vector.broadcast %19 : f32 to vector<128x1xf32>
      %201 = arith.mulf %200, %175 : vector<128x1xf32>
      %202 = vector.broadcast %21 : f32 to vector<128x1xf32>
      %203 = arith.mulf %202, %176 : vector<128x1xf32>
      %204 = arith.addf %201, %203 : vector<128x1xf32>
      %205 = vector.broadcast %23 : f32 to vector<128x1xf32>
      %206 = arith.mulf %205, %177 : vector<128x1xf32>
      %207 = arith.addf %204, %206 : vector<128x1xf32>
      %208 = vector.broadcast %29 : f32 to vector<128x1xf32>
      %209 = arith.addf %207, %208 : vector<128x1xf32>
      %c0_36 = arith.constant 0 : index
      %c2_37 = arith.constant 2 : index
      %210 = vector.load %arg6[%c0_36, %c2_37] : memref<128x8xf32, #tpu.memory_space<vmem>>, vector<128x1xf32>
      tpu.vector_store %arg6[%c0_36, %c2_37], %209 {strides = array<i32>} : memref<128x8xf32, #tpu.memory_space<vmem>>, vector<128x1xf32>,
      %cst_38 = arith.constant 1.000000e+30 : f32
      %211 = vector.broadcast %cst_38 : f32 to vector<24x128xf32>
      %c0_39 = arith.constant 0 : index
      %c0_40 = arith.constant 0 : index
      %212 = vector.load %arg7[%c0_39, %c0_40] : memref<24x128xf32, #tpu.memory_space<vmem>>, vector<24x128xf32>
      tpu.vector_store %arg7[%c0_39, %c0_40], %211 {strides = array<i32>} : memref<24x128xf32, #tpu.memory_space<vmem>>, vector<24x128xf32>,
      %c0_i32_41 = arith.constant 0 : i32
      %c128_i32 = arith.constant 128 : i32
      %213 = arith.addi %c0_i32_41, %c128_i32 : i32
      %c1_i32 = arith.constant 1 : i32
      scf.for %arg8 = %c0_i32_41 to %213 step %c1_i32  : i32 {
        %c1_i32_58 = arith.constant 1 : i32
        %250 = arith.muli %arg8, %c1_i32_58 : i32
        %c0_i32_59 = arith.constant 0 : i32
        %251 = arith.addi %c0_i32_59, %250 : i32
        %252 = arith.index_cast %251 : i32 to index
        %c0_60 = arith.constant 0 : index
        %253 = vector.load %arg6[%252, %c0_60] : memref<128x8xf32, #tpu.memory_space<vmem>>, vector<1x8xf32>
        %254 = vector.extract_strided_slice %253 {offsets = [0, 0], sizes = [1, 1], strides = [1, 1]} : vector<1x8xf32> to vector<1x1xf32>
        %255 = vector.broadcast %254 : vector<1x1xf32> to vector<24x128xf32>
        %256 = arith.subf %136, %255 : vector<24x128xf32>
        %257 = vector.extract_strided_slice %253 {offsets = [0, 1], sizes = [1, 1], strides = [1, 1]} : vector<1x8xf32> to vector<1x1xf32>
        %258 = vector.broadcast %257 : vector<1x1xf32> to vector<24x128xf32>
        %259 = arith.subf %149, %258 : vector<24x128xf32>
        %260 = vector.extract_strided_slice %253 {offsets = [0, 2], sizes = [1, 1], strides = [1, 1]} : vector<1x8xf32> to vector<1x1xf32>
        %261 = vector.broadcast %260 : vector<1x1xf32> to vector<24x128xf32>
        %262 = arith.subf %162, %261 : vector<24x128xf32>
        %263 = arith.mulf %256, %256 : vector<24x128xf32>
        %264 = arith.mulf %259, %259 : vector<24x128xf32>
        %265 = arith.addf %263, %264 : vector<24x128xf32>
        %266 = arith.mulf %262, %262 : vector<24x128xf32>
        %267 = arith.addf %265, %266 : vector<24x128xf32>
        %c0_61 = arith.constant 0 : index
        %c0_62 = arith.constant 0 : index
        %268 = vector.load %arg7[%c0_61, %c0_62] : memref<24x128xf32, #tpu.memory_space<vmem>>, vector<24x128xf32>
        %269 = arith.minimumf %268, %267 : vector<24x128xf32>
        %c0_63 = arith.constant 0 : index
        %c0_64 = arith.constant 0 : index
        %270 = vector.load %arg7[%c0_63, %c0_64] : memref<24x128xf32, #tpu.memory_space<vmem>>, vector<24x128xf32>
        tpu.vector_store %arg7[%c0_63, %c0_64], %269 {strides = array<i32>} : memref<24x128xf32, #tpu.memory_space<vmem>>, vector<24x128xf32>,
      }
      %c128_i32_42 = arith.constant 128 : i32
      %c0_43 = arith.constant 0 : index
      %c0_44 = arith.constant 0 : index
      %214 = vector.load %arg7[%c0_43, %c0_44] : memref<24x128xf32, #tpu.memory_space<vmem>>, vector<24x128xf32>
      %215 = math.sqrt %214 : vector<24x128xf32>
      %216 = vector.broadcast %46 : vector<1x128xf32> to vector<24x128xf32>
      %217 = arith.mulf %215, %216 : vector<24x128xf32>
      %cst_45 = arith.constant dense<0.000000e+00> : vector<24xf32>
      %218 = vector.multi_reduction <add>, %217, %cst_45 [1] : vector<24x128xf32> to vector<24xf32>
      %219 = vector.shape_cast %218 : vector<24xf32> to vector<24x1xf32>
      %cst_46 = arith.constant 1.562500e-02 : f32
      %220 = vector.broadcast %cst_46 : f32 to vector<24x1xf32>
      %221 = arith.mulf %219, %220 : vector<24x1xf32>
      %222 = arith.mulf %221, %166 : vector<24x1xf32>
      %223 = math.log %166 : vector<24x1xf32>
      %cst_47 = arith.constant 0.00999999977 : f32
      %224 = vector.broadcast %cst_47 : f32 to vector<24x1xf32>
      %225 = arith.mulf %224, %223 : vector<24x1xf32>
      %226 = arith.subf %222, %225 : vector<24x1xf32>
      %cst_48 = arith.constant 0.000000e+00 : f32
      %227 = vector.broadcast %cst_48 : f32 to vector<24x1xf32>
      %228 = arith.select %164, %221, %227 : vector<24x1xi1>, vector<24x1xf32>
      %229 = vector.shape_cast %228 : vector<24x1xf32> to vector<1x24x1xf32>
      %cst_49 = arith.constant dense<0.000000e+00> : vector<1xf32>
      %230 = vector.multi_reduction <add>, %229, %cst_49 [1, 2] : vector<1x24x1xf32> to vector<1xf32>
      %231 = vector.shape_cast %230 : vector<1xf32> to vector<1x1x1xf32>
      %232 = vector.extract %231[0, 0, 0] : f32 from vector<1x1x1xf32>
      %233 = vector.broadcast %232 : f32 to vector<1x1xf32>
      %cst_50 = arith.constant 0.000000e+00 : f32
      %234 = vector.broadcast %cst_50 : f32 to vector<24x1xf32>
      %235 = arith.select %164, %226, %234 : vector<24x1xi1>, vector<24x1xf32>
      %236 = vector.shape_cast %235 : vector<24x1xf32> to vector<1x24x1xf32>
      %cst_51 = arith.constant dense<0.000000e+00> : vector<1xf32>
      %237 = vector.multi_reduction <add>, %236, %cst_51 [1, 2] : vector<1x24x1xf32> to vector<1xf32>
      %238 = vector.shape_cast %237 : vector<1xf32> to vector<1x1x1xf32>
      %239 = vector.extract %238[0, 0, 0] : f32 from vector<1x1x1xf32>
      %240 = vector.broadcast %239 : f32 to vector<1x1xf32>
      %241 = arith.mulf %5, %3 : f32
      %242 = vector.broadcast %241 : f32 to vector<1x1xf32>
      %243 = arith.mulf %233, %242 : vector<1x1xf32>
      %244 = vector.shape_cast %243 : vector<1x1xf32> to vector<1x1x1xf32>
      %c0_52 = arith.constant 0 : index
      %c0_53 = arith.constant 0 : index
      %c0_54 = arith.constant 0 : index
      %245 = vector.load %arg5[%c0_52, %c0_53, %c0_54] : memref<1x1x2xf32, #tpu.memory_space<vmem>>, vector<1x1x1xf32>
      tpu.vector_store %arg5[%c0_52, %c0_53, %c0_54], %244 {strides = array<i32>} : memref<1x1x2xf32, #tpu.memory_space<vmem>>, vector<1x1x1xf32>,
      %246 = vector.broadcast %241 : f32 to vector<1x1xf32>
      %247 = arith.mulf %240, %246 : vector<1x1xf32>
      %248 = vector.shape_cast %247 : vector<1x1xf32> to vector<1x1x1xf32>
      %c0_55 = arith.constant 0 : index
      %c0_56 = arith.constant 0 : index
      %c1_57 = arith.constant 1 : index
      %249 = vector.load %arg5[%c0_55, %c0_56, %c1_57] : memref<1x1x2xf32, #tpu.memory_space<vmem>>, vector<1x1x1xf32>
      tpu.vector_store %arg5[%c0_55, %c0_56, %c1_57], %248 {strides = array<i32>} : memref<1x1x2xf32, #tpu.memory_space<vmem>>, vector<1x1x1xf32>,
    } else {
    }
    return
  }
  func.func @transform_0(%arg0: i32) -> (i32, i32) {
    %c0_i32 = arith.constant 0 : i32
    %c0_i32_0 = arith.constant 0 : i32
    %c0_i32_1 = arith.constant 0 : i32
    return %c0_i32, %c0_i32_0 : i32, i32
  }
  func.func @transform_1(%arg0: i32) -> (i32, i32, i32) {
    %c0_i32 = arith.constant 0 : i32
    %c0_i32_0 = arith.constant 0 : i32
    %c0_i32_1 = arith.constant 0 : i32
    return %arg0, %c0_i32, %c0_i32_0 : i32, i32, i32
  }
  func.func @transform_2(%arg0: i32) -> (i32, i32, i32) {
    %c0_i32 = arith.constant 0 : i32
    %c0_i32_0 = arith.constant 0 : i32
    %c0_i32_1 = arith.constant 0 : i32
    return %arg0, %c0_i32, %c0_i32_0 : i32, i32, i32
  }
  func.func @transform_3(%arg0: i32) -> (i32, i32, i32) {
    %c0_i32 = arith.constant 0 : i32
    %c0_i32_0 = arith.constant 0 : i32
    %c0_i32_1 = arith.constant 0 : i32
    return %arg0, %c0_i32, %c0_i32_0 : i32, i32, i32
  }
  func.func @transform_4(%arg0: i32) -> (i32, i32, i32) {
    %c0_i32 = arith.constant 0 : i32
    %c0_i32_0 = arith.constant 0 : i32
    %c0_i32_1 = arith.constant 0 : i32
    return %arg0, %c0_i32, %c0_i32_0 : i32, i32, i32
  }
}

</mosaic_0001>

<bundles_post_ra>
// kernel: tpu_custom_call.1
= control target key start
LH: loop header
LB: loop body
LE: loop exit
PB: predicated region body
PF: predicated region fallthrough
CT: control target
= control target key end

     0   :  { %s3736_s0 = inlined_call_operand.vmem [shape: f32[2,16], index: 0, kind: input, shape index: {}]   ;;  %s3737_s1 = inlined_call_operand.vmem [shape: f32[2,24,16], index: 1, kind: input, shape index: {}]   ;;  %s3738_s2 = inlined_call_operand.vmem [shape: f32[2,8,128], index: 2, kind: input, shape index: {}]   ;;  %s3739_s3 = inlined_call_operand.vmem [shape: f32[2,128,8], index: 3, kind: input, shape index: {}]   ;;  %s3740_s4 = inlined_call_operand.hbm [shape: f32[2,1,2], index: 4, kind: output, shape index: {}]  }
   0x1   :  { %3752 = sst [smem:[#allocation18_spill]] %s3736_s0 }
   0x2   :  { %3753 = sst [smem:[#allocation19_spill]] %s3737_s1 }
   0x3   :  { %3754 = sst [smem:[#allocation20_spill]] %s3739_s3 }
   0x4   :  { %9 = vsyncpa [#allocation6], 0 }
   0x5   :  { %10 = vsyncpa [#allocation5], 0 }
   0x6   :  { %12 = vsyncpa [#allocation5 + $0x1], 0  ;;  %s2552_s15 = smov 0   ;;  %s2554_s16 = smov 0  }
   0x7   :  { %s2556_s17 = smov 0   ;;  %s2558_s18 = smov 0  }
   0x8 LB: > { %3755 = sst [smem:[#allocation10_spill]] %s2486_s15  ;;  %s2573_s19 = sadd.s32 4294967295, %s2498_s18   ;;  %s2498_s18 = sphi %s2558_s18, %s3776_s18   ;;  %s2494_s17 = sphi %s2556_s17, %s3778_s17   ;;  %s2490_s16 = sphi %s2554_s16, %s3780_s16   ;;  %s2486_s15 = sphi %s2552_s15, %s3779_s15  }
   0x9   : > { %3756 = sst [smem:[#allocation11_spill]] %s2494_s17  ;;  %s2260_s20 = sadd.s32 4294967294, %s2498_s18  }
   0xa   : > { %s2577_s21 = sadd.s32 1, %s2498_s18   ;;  %s124_s22 = sadd.s32 1, %s2494_s17 }
   0xb   : > { %3757 = sst [smem:[#allocation12_spill]] %s2577_s21  ;;  %s121_s23 = ssub.s32 %s2498_s18, %s2577_s21 }
   0xc   : > { %p134_p0 = scmp.ne.s32.totalorder %s2494_s17, %s2490_s16  ;;  %p122_p1 = scmp.eq.s32.totalorder %s121_s23, 0 }
   0xd   : > { %p135_p2 = scmp.eq.s32.totalorder %s2573_s19, 1  ;;  %p140_p3 = scmp.ne.s32.totalorder %s2490_s16, %s2486_s15 }
   0xe   : > { %p141_p4 = scmp.eq.s32.totalorder %s2260_s20, 1  ;;  %p2261_p7 = scmp.ge.s32.totalorder %s2498_s18, 1 }
   0xf   : > { %s2588_s24 = scalar_select %p122_p1, %s2494_s17, %s124_s22  }
  0x10   : > { %p2590_p5 = por %p135_p2, %p134_p0  ;;  %p2594_p6 = por %p141_p4, %p140_p3 }
  0x11   : > { %3758 = sst [smem:[#allocation13_spill]] %s2588_s24  ;;  %p148_p8 = scmp.lt.s32.totalorder %s2498_s18, 3 }
  0x12   : > { %s3760_s26 = scalar_select %p2594_p6, 1, 0 }
  0x13   : > { %p2304_p9 = scmp.eq.s32.totalorder %s2573_s19, 0  ;;  %p2601_p10 = pnand %p2261_p7, %p148_p8 }
  0x14   : > { %3761 = sst [smem:[#allocation14_spill]] %s3760_s26  ;;  %s3763_s0 = sld [smem:[#allocation18_spill]] }
  0x15   : > { %p2296_p11 = pneg %p2601_p10 }
  0x17   : > { %p2297_p12 = pnand %p2304_p9, %p2296_p11 }
  0x19   : > { %p2415_p0 = pneg %p2297_p12 }
  0x1a   : > { %s161_s30 = sshll.u32 %s3763_s0, 4  ;;  %s162_s30 = int_to_ptr.vmem [resolvable:$true] %s161_s30 }
  0x1b   : > { %s2413_s5 = scalar_lea.vmem %s162_s30, 32  ;;  %p2421_p3 = scmp.lt.s32.totalorder %s162_s30, %s162_s30 }
  0x1c   : > { %p2414_p13 = scmp.ne.s32.totalorder %s162_s30, %s2413_s5  ;;  %p2422_p4 = scmp.lt.s32.totalorder %s2413_s5, %s2413_s5 }
  0x1e   : > { %p2416_p1 = pnand %p2415_p0, %p2414_p13  ;;  %p2423_p7 = por %p2422_p4, %p2421_p3 }
  0x20   : > { %p2417_p2 = pneg %p2416_p1 }
  0x22   : > { %p2424_p8 = pnand %p2423_p7, %p2417_p2 }
  0x24   : > { %2427 = shalt.err (!%p2424_p8)
}
  0x25   : > { %s2504_s6 = smov [#allocation4]   ;;  %197 = sbr.rel (%p2601_p10) target bundleno = 2502 (0x9c6), region = 36 }
  0x26   : > { %2299 = dma.vmem_to_smem (!%p2297_p12), %s162_s30, 32, %s2504_s6, [#allocation6]  }
  0x2c   : > { %2477 = dma.done.wait (%p2304_p9), [#allocation6], 32  }
  0x2d   : > { %2479 = vsyncadd (%p2304_p9), [#allocation6], 4294967264 }
  0x2e   : > { %203 = sfence }
  0x2f   : > { %p232_p11 = scmp.lt.s32.totalorder %s2573_s19, 1  ;;  %s3764_s3 = sld [smem:[#allocation20_spill]]  ;;  %v2511_v33 = vmov 4   ;;  %v2512_v50 = vmov 5  }
  0x30   : > { %s3765_s1 = sld [smem:[#allocation19_spill]]  ;;  %s2505_s22 = smov 127   ;;  %2370 = vset.pattern.permute.xlu1 %v2511_v33  ;;  %2369 = vset.pattern.permute.xlu0 %v2511_v33 }
  0x31   : > { %s2620_s7 = scalar_select %p232_p11, %s2573_s19, 1 }
  0x32   : > { %s2506_s23 = smov 126   ;;  %s2507_s27 = smov 125  }
  0x33   : > { %s2275_s8 = smul.u32 24, %s2620_s7  ;;  %s2274_s9 = sshll.u32 %s2620_s7, 7 }
  0x34   : > { %s2508_s28 = smov 3   ;;  %s2509_s29 = smov 1  }
  0x35   : > { %s2627_s12 = scalar_lea.vmem %s3764_s3, %s2274_s9  ;;  %s2510_s30 = smov 2  }
  0x36   : > { %s236_s20 = scalar_lea.vmem %s3765_s1, %s2275_s8  ;;  %s2845_s5 = sshll.u32 %s2573_s19, 7 }
  0x37   : > { %v2632_v0 = vld [vmem:[%s236_s20 + $0x10] sm:$0xff]  ;;  %v2634_v1 = vld [vmem:[%s236_s20] sm:$0xff]  ;;  %v2636_v2 = vld [vmem:[%s236_s20 + $0x8] sm:$0xff]  ;;  %s2850_s6 = sld [smem:[#allocation4 + %s2845_s5]]  ;;  %s248_s9 = sadd.s32 1, %s2845_s5 }
  0x38   : > { %3766 = vst [vmem:[#allocation15_spill] sm:$0xff] %v2632_v0  ;;  %3767 = vst [vmem:[#allocation16_spill] sm:$0xff] %v2634_v1  ;;  %v282_v3 = vmul.f32 %v2632_v0, %v2632_v0  ;;  %v280_v4 = vmul.f32 %v2634_v1, %v2634_v1  ;;  %v281_v5 = vmul.f32 %v2636_v2, %v2636_v2  ;;  %s2856_s10 = sld [smem:[#allocation4 + %s248_s9]]  ;;  %s250_s11 = sadd.s32 2, %s2845_s5  ;;  %vm863_vm0 = vcmp.gt.f32.partialorder %v2636_v2, 0.5 }
  0x39   : > { %3768 = vst [vmem:[#allocation17_spill] sm:$0xff] %v2636_v2  ;;  %s252_s13 = sadd.s32 3, %s2845_s5  ;;  %s2860_s14 = sld [smem:[#allocation4 + %s250_s11]]  ;;  %vm862_vm1 = vcmp.gt.f32.partialorder %v2634_v1, 0.5  ;;  %vm864_vm2 = vcmp.gt.f32.partialorder %v2632_v0, 0.5 }
  0x3a   : > { %290 = vrot.lane.b32.xlu1 %v282_v3, %s2505_s22  ;;  %286 = vrot.lane.b32.xlu0 %v280_v4, %s2505_s22  ;;  %s2862_s20 = sld [smem:[#allocation4 + %s252_s13]]  ;;  %s262_s11 = sadd.s32 8, %s2845_s5 }
  0x3b   : > { %s264_s0 = sadd.s32 9, %s2845_s5  ;;  %s2878_s13 = sld [smem:[#allocation4 + %s262_s11]] }
  0x3c   : > { %s2880_s1 = sld [smem:[#allocation4 + %s264_s0]]  ;;  %s266_s3 = sadd.s32 10, %s2845_s5 }
  0x3d   : > { %s268_s24 = sadd.s32 11, %s2845_s5  ;;  %s270_s17 = sadd.s32 12, %s2845_s5 }
  0x3e   : > { %298 = vrot.lane.b32.xlu1 %v280_v4, %s2506_s23  ;;  %288 = vrot.lane.b32.xlu0 %v281_v5, %s2505_s22  ;;  %s272_s21 = sadd.s32 13, %s2845_s5  ;;  %s2890_s26 = sld [smem:[#allocation4 + %s270_s17]] }
  0x3f   : > { %p877_p9 = scmp.le.f32.partialorder %s2850_s6, 0.5  ;;  %s2267_s0 = sshll.u32 %s2620_s7, 3 }
  0x40   : > { %vm1032_vm9 = vcmask (%p877_p9), 7168   ;;  %s1078_s11 = smul.f32 (%p877_p9), %s2860_s14, %s2856_s10  ;;  %vm1081_vm10 = vcmask (%p877_p9), 0   ;;  %vm1084_vm11 = vcmask (%p877_p9), 8200  }
  0x42   : > { %302 = vrot.lane.b32.xlu1 %v282_v3, %s2506_s23  ;;  %300 = vrot.lane.b32.xlu0 %v281_v5, %s2506_s23 }
  0x46   : > { %312 = vrot.lane.b32.xlu1 %v281_v5, %s2507_s27  ;;  %310 = vrot.lane.b32.xlu0 %v280_v4, %s2507_s27 }
  0x4a   : > { %314 = vrot.lane.b32.xlu0 %v282_v3, %s2507_s27 }
  0xac   : > { %v291_v6 = vpop.permute.xlu1 %290  ;;  %v287_v7 = vpop.permute.xlu0 %286 }
  0xad   : > { %v295_v12 = vadd.f32 %v287_v7, %v280_v4  ;;  %v297_v14 = vadd.f32 %v291_v6, %v282_v3 }
  0xb0   : > { %v299_v8 = vpop.permute.xlu1 %298  ;;  %v289_v9 = vpop.permute.xlu0 %288 }
  0xb1   : > { %v296_v13 = vadd.f32 %v289_v9, %v281_v5  ;;  %v307_v15 = vadd.f32 %v299_v8, %v295_v12 }
  0xb4   : > { %v303_v10 = vpop.permute.xlu1 %302  ;;  %v301_v11 = vpop.permute.xlu0 %300 }
  0xb5   : > { %v308_v16 = vadd.f32 %v301_v11, %v296_v13  ;;  %v309_v21 = vadd.f32 %v303_v10, %v297_v14 }
  0xb8   : > { %v313_v17 = vpop.permute.xlu1 %312  ;;  %v311_v18 = vpop.permute.xlu0 %310 }
  0xb9   : > { %v319_v19 = vadd.f32 %v311_v18, %v307_v15  ;;  %v320_v20 = vadd.f32 %v313_v17, %v308_v16 }
  0xbb   : > { %v322_v22 = vmax.f32 %v319_v19, 1e-12  ;;  %v323_v25 = vmax.f32 %v320_v20, 1e-12 }
  0xbc   : > { %v315_v23 = vpop.permute.xlu0 %314 }
  0xbd   : > { %v321_v24 = vadd.f32 %v315_v23, %v309_v21  ;;  %2383 = vrsqrt.f32 %v322_v22 }
  0xbf   : > { %v324_v26 = vmax.f32 %v321_v24, 1e-12 }
  0xc1   : > { %2385 = vrsqrt.f32 %v324_v26 }
  0xc2   : > { %2387 = vrsqrt.f32 %v323_v25 }
  0xc7   : > { %v2384_v27 = vpop.eup %2383 }
  0xc8   : > { %358 = vrot.lane.b32.xlu0 %v2384_v27, %s2508_s28  ;;  %334 = vrot.lane.b32.xlu1 %v2384_v27, %s2509_s29  ;;  %v2661_v31 = vmul.f32 %v2384_v27, %v2634_v1 }
  0xca   : > { %v415_v14 = vmul.f32 2.0, %v2661_v31  ;;  %v541_v26 = vmul.f32 -2.0, %v2661_v31 }
  0xcb   : > { %v2386_v28 = vpop.eup %2385 }
  0xcc   : > { %v2388_v29 = vpop.eup %2387  ;;  %362 = vrot.lane.b32.xlu0 %v2386_v28, %s2508_s28  ;;  %v2665_v32 = vmul.f32 %v2386_v28, %v2632_v0 }
  0xcd   : > { %360 = vrot.lane.b32.xlu1 %v2388_v29, %s2508_s28  ;;  %v2657_v30 = vmul.f32 %v2388_v29, %v2636_v2 }
  0xce   : > { %v417_v20 = vmul.f32 2.0, %v2665_v32 }
  0xcf   : > { %v416_v19 = vmul.f32 2.0, %v2657_v30  ;;  %v542_v25 = vmul.f32 -2.0, %v2657_v30 }
  0xd0   : > { %338 = vrot.lane.b32.xlu0 %v2386_v28, %s2509_s29 }
  0xd1   : > { %336 = vrot.lane.b32.xlu1 %v2388_v29, %s2509_s29 }
  0xd4   : > { %348 = vrot.lane.b32.xlu0 %v2388_v29, %s2510_s30 }
  0xd5   : > { %346 = vrot.lane.b32.xlu1 %v2384_v27, %s2510_s30 }
  0xd8   : > { %495 = vrot.lane.b32.xlu0 %v2657_v30, %s2508_s28 }
  0xd9   : > { %350 = vrot.lane.b32.xlu1 %v2386_v28, %s2510_s30  ;;  %s258_s30 = sadd.s32 6, %s2845_s5 }
  0xda   : > { %s2872_s9 = sld [smem:[#allocation4 + %s258_s30]] }
  0xdb   : > { %s2892_s30 = sld [smem:[#allocation4 + %s272_s21]]  ;;  %s240_s21 = scalar_lea.vmem %s3738_s2, %s2267_s0 }
  0xdd   : > { %493 = vrot.lane.b32.xlu1 %v2661_v31, %s2508_s28 }
  0xe1   : > { %497 = vrot.lane.b32.xlu1 %v2665_v32, %s2508_s28 }
 0x13a   : > { %v335_v34 = vpop.permute.xlu1 %334  ;;  %v359_v35 = vpop.permute.xlu0 %358 }
 0x13b   : > { %v367_v45 = vmul.f32 %v359_v35, %v2634_v1  ;;  %v2711_v52 = vmul.f32 %v335_v34, %v2634_v1 }
 0x13d   : > { %v373_v51 = vmul.f32 %v367_v45, %v367_v45  ;;  %v487_v63 = vmul.f32 2.0, %v367_v45  ;;  %v397_v7 = vmul.f32 2.0, %v2711_v52 }
 0x13e   : > { %v363_v37 = vpop.permute.xlu0 %362 }
 0x13f   : > { %v361_v36 = vpop.permute.xlu1 %360  ;;  %v369_v48 = vmul.f32 %v363_v37, %v2632_v0 }
 0x140   : > { %v368_v47 = vmul.f32 %v361_v36, %v2636_v2  ;;  %v543_v36 = vmul.f32 -2.0, %v2665_v32 }
 0x141   : > { %v375_v53 = vmul.f32 %v369_v48, %v369_v48  ;;  %v489_v5 = vmul.f32 2.0, %v369_v48 }
 0x142   : > { %v339_v39 = vpop.permute.xlu0 %338  ;;  %v374_v55 = vmul.f32 %v368_v47, %v368_v47  ;;  %v488_v59 = vmul.f32 2.0, %v368_v47 }
 0x143   : > { %v337_v38 = vpop.permute.xlu1 %336  ;;  %v2717_v54 = vmul.f32 %v339_v39, %v2632_v0 }
 0x144   : > { %v2705_v49 = vmul.f32 %v337_v38, %v2636_v2 }
 0x145   : > { %v399_v13 = vmul.f32 2.0, %v2717_v54 }
 0x146   : > { %v349_v41 = vpop.permute.xlu0 %348  ;;  %v398_v8 = vmul.f32 2.0, %v2705_v49 }
 0x147   : > { %v347_v40 = vpop.permute.xlu1 %346  ;;  %v2672_v43 = vmul.f32 %v349_v41, %v2636_v2 }
 0x148   : > { %v2669_v42 = vmul.f32 %v347_v40, %v2634_v1 }
 0x149   : > { %405 = vrot.lane.b32.xlu0 %v2672_v43, %s2505_s22  ;;  %v2728_v56 = vmul.f32 %v2672_v43, %v2672_v43 }
 0x14a   : > { %403 = vrot.lane.b32.xlu1 %v2669_v42, %s2505_s22  ;;  %v496_v57 = vpop.permute.xlu0 %495  ;;  %v2732_v58 = vmul.f32 %v2669_v42, %v2669_v42  ;;  %v559_v32 = vmul.f32 2.0, %v2669_v42 }
 0x14b   : > { %v351_v44 = vpop.permute.xlu1 %350  ;;  %v503_v60 = vmul.f32 %v496_v57, %v488_v59 }
 0x14c   : > { %v2680_v46 = vmul.f32 %v351_v44, %v2632_v0 }
 0x14d   : > { %421 = vrot.lane.b32.xlu0 %v367_v45, %s2507_s27 }
 0x14e   : > { %407 = vrot.lane.b32.xlu1 %v2680_v46, %s2505_s22  ;;  %v2740_v62 = vmul.f32 %v2680_v46, %v2680_v46 }
 0x14f   : > { %v494_v61 = vpop.permute.xlu1 %493 }
 0x150   : > { %v502_v3 = vmul.f32 %v494_v61, %v487_v63 }
 0x151   : > { %425 = vrot.lane.b32.xlu0 %v369_v48, %s2507_s27 }
 0x152   : > { %423 = vrot.lane.b32.xlu1 %v368_v47, %s2507_s27 }
 0x153   : > { %v498_v4 = vpop.permute.xlu1 %497 }
 0x154   : > { %v504_v6 = vmul.f32 %v498_v4, %v489_v5 }
 0x155   : > { %448 = vrot.lane.b32.xlu0 %v2669_v42, %s2506_s23 }
 0x156   : > { %450 = vrot.lane.b32.xlu1 %v2672_v43, %s2506_s23 }
 0x159   : > { %452 = vrot.lane.b32.xlu0 %v2680_v46, %s2506_s23 }
 0x15a   : > { %460 = vrot.lane.b32.xlu1 %v367_v45, %s2506_s23 }
 0x15d   : > { %462 = vrot.lane.b32.xlu0 %v368_v47, %s2506_s23 }
 0x15e   : > { %464 = vrot.lane.b32.xlu1 %v369_v48, %s2506_s23 }
 0x161   : > { %562 = vrot.lane.b32.xlu0 %v367_v45, %s2505_s22 }
 0x162   : > { %564 = vrot.lane.b32.xlu1 %v368_v47, %s2505_s22  ;;  %v560_v47 = vmul.f32 2.0, %v2672_v43 }
 0x165   : > { %566 = vrot.lane.b32.xlu0 %v369_v48, %s2505_s22 }
 0x166   : > { %701 = vperm.xlu1 %2370, %v2636_v2  }
 0x169   : > { %696 = vperm.xlu0 %2369, %v2634_v1  }
 0x16a   : > { %706 = vperm.xlu1 %2370, %v2632_v0  }
 0x16d   : > { %549 = vrot.lane.b32.xlu0 %v2705_v49, %s2505_s22 }
 0x16e   : > { %2371 = vset.pattern.permute.xlu1 %v2512_v50  ;;  %2372 = vset.pattern.permute.xlu0 %v2512_v50 }
 0x16f   : > { %773 = vperm.xlu1 %2371, %v2634_v1  }
 0x171   : > { %379 = vrot.lane.b32.xlu0 %v373_v51, %s2505_s22 }
 0x173   : > { %547 = vrot.lane.b32.xlu1 %v2711_v52, %s2505_s22 }
 0x175   : > { %383 = vrot.lane.b32.xlu0 %v375_v53, %s2505_s22 }
 0x177   : > { %551 = vrot.lane.b32.xlu1 %v2717_v54, %s2505_s22 }
 0x179   : > { %523 = vrot.lane.b32.xlu0 %v373_v51, %s2506_s23 }
 0x17b   : > { %381 = vrot.lane.b32.xlu1 %v374_v55, %s2505_s22 }
 0x17d   : > { %527 = vrot.lane.b32.xlu0 %v375_v53, %s2506_s23 }
 0x17f   : > { %525 = vrot.lane.b32.xlu1 %v374_v55, %s2506_s23  ;;  %v561_v55 = vmul.f32 2.0, %v2680_v46 }
 0x181   : > { %606 = vrot.lane.b32.xlu0 %v2728_v56, %s2505_s22 }
 0x183   : > { %604 = vrot.lane.b32.xlu1 %v2732_v58, %s2505_s22 }
 0x185   : > { %510 = vrot.lane.b32.xlu0 %v503_v60, %s2506_s23  ;;  %v2513_v60 = vmov 1  }
 0x187   : > { %608 = vrot.lane.b32.xlu1 %v2740_v62, %s2505_s22 }
 0x18b   : > { %508 = vrot.lane.b32.xlu1 %v502_v3, %s2506_s23 }
 0x18f   : > { %512 = vrot.lane.b32.xlu1 %v504_v6, %s2506_s23 }
 0x1bb   : > { %v406_v10 = vpop.permute.xlu0 %405 }
 0x1bc   : > { %v404_v9 = vpop.permute.xlu1 %403  ;;  %v2751_v12 = vmul.f32 %v406_v10, %v398_v8 }
 0x1bd   : > { %v2749_v11 = vmul.f32 %v404_v9, %v397_v7 }
 0x1bf   : > { %v422_v16 = vpop.permute.xlu0 %421 }
 0x1c0   : > { %v408_v15 = vpop.permute.xlu1 %407  ;;  %v430_v18 = vmul.f32 %v422_v16, %v415_v14 }
 0x1c1   : > { %v2755_v17 = vmul.f32 %v408_v15, %v399_v13 }
 0x1c2   : > { %436 = vrot.lane.b32.xlu1 %v430_v18, %s2509_s29 }
 0x1c3   : > { %v426_v22 = vpop.permute.xlu0 %425 }
 0x1c4   : > { %v424_v21 = vpop.permute.xlu1 %423  ;;  %v432_v24 = vmul.f32 %v426_v22, %v417_v20 }
 0x1c5   : > { %v431_v23 = vmul.f32 %v424_v21, %v416_v19 }
 0x1c6   : > { %440 = vrot.lane.b32.xlu1 %v432_v24, %s2509_s29 }
 0x1c7   : > { %438 = vrot.lane.b32.xlu0 %v431_v23, %s2509_s29  ;;  %v449_v28 = vpop.permute.xlu0 %448 }
 0x1c8   : > { %v451_v27 = vpop.permute.xlu1 %450  ;;  %v2768_v34 = vmul.f32 %v449_v28, %v415_v14  ;;  %v2770_v35 = vmul.f32 %v541_v26, %v449_v28  ;;  %v520_v28 = vmul.f32 %v2711_v52, %v2711_v52  ;;  %v2514_v52 = vmov 2  }
 0x1c9   : > { %v2764_v29 = vmul.f32 %v451_v27, %v416_v19  ;;  %v2766_v33 = vmul.f32 %v542_v25, %v451_v27 }
 0x1cb   : > { %v453_v38 = vpop.permute.xlu0 %452 }
 0x1cc   : > { %v461_v37 = vpop.permute.xlu1 %460  ;;  %v2773_v40 = vmul.f32 %v453_v38, %v417_v20  ;;  %v2775_v30 = vmul.f32 %v543_v36, %v453_v38 }
 0x1cd   : > { %v469_v39 = vmul.f32 %v461_v37, %v397_v7 }
 0x1cf   : > { %475 = vrot.lane.b32.xlu0 %v469_v39, %s2505_s22  ;;  %v463_v41 = vpop.permute.xlu0 %462 }
 0x1d0   : > { %v465_v31 = vpop.permute.xlu1 %464  ;;  %v470_v45 = vmul.f32 %v463_v41, %v398_v8 }
 0x1d1   : > { %v471_v44 = vmul.f32 %v465_v31, %v399_v13  ;;  %v522_v31 = vmul.f32 %v2717_v54, %v2717_v54 }
 0x1d2   : > { %477 = vrot.lane.b32.xlu1 %v470_v45, %s2505_s22 }
 0x1d3   : > { %479 = vrot.lane.b32.xlu0 %v471_v44, %s2505_s22  ;;  %v563_v50 = vpop.permute.xlu0 %562  ;;  %s254_s22 = sadd.s32 4, %s2845_s5 }
 0x1d4   : > { %v565_v48 = vpop.permute.xlu1 %564  ;;  %v571_v53 = vmul.f32 %v563_v50, %v559_v32  ;;  %s2866_s27 = sld [smem:[#allocation4 + %s254_s22]] }
 0x1d5   : > { %v572_v51 = vmul.f32 %v565_v48, %v560_v47  ;;  %s2884_s22 = sld [smem:[#allocation4 + %s266_s3]] }
 0x1d7   : > { %579 = vrot.lane.b32.xlu1 %v572_v51, %s2506_s23  ;;  %577 = vrot.lane.b32.xlu0 %v571_v53, %s2506_s23  ;;  %v567_v57 = vpop.permute.xlu0 %566 }
 0x1d8   : > { %v573_v59 = vmul.f32 %v567_v57, %v561_v55 }
 0x1db   : > { %781 = vperm.xlu1 %2371, %v2632_v0   ;;  %581 = vrot.lane.b32.xlu0 %v573_v59, %s2506_s23  ;;  %s256_s23 = sadd.s32 5, %s2845_s5 }
 0x1dc   : > { %s2868_s28 = sld [smem:[#allocation4 + %s256_s23]] }
 0x1dd   : > { %s2886_s23 = sld [smem:[#allocation4 + %s268_s24]]  ;;  %s3769_s24 = sand.u32 1, %s2490_s16  }
 0x1de   : > { %s2999_s7 = scalar_lea.vmem [#allocation7], %s3769_s24 }
 0x1df   : > { %2374 = vset.pattern.permute.xlu1 %v2513_v60  ;;  %777 = vperm.xlu0 %2372, %v2636_v2  }
 0x1e3   : > { %2373 = vset.pattern.permute.xlu0 %v2513_v60 }
 0x1e5   : > { %v2790_v42 = vpop.permute.xlu1 %701 }
 0x1e8   : > { %v2792_v43 = vpop.permute.xlu0 %696 }
 0x1e9   : > { %v2794_v61 = vpop.permute.xlu1 %706 }
 0x1ec   : > { %v550_v46 = vpop.permute.xlu0 %549 }
 0x1ed   : > { %v2796_v63 = vmul.f32 %v550_v46, %v542_v25  ;;  %v2798_v3 = vmul.f32 %v550_v46, %v416_v19 }
 0x1ee   : > { %v2800_v4 = vpop.permute.xlu1 %773 }
 0x1f0   : > { %v380_v5 = vpop.permute.xlu0 %379 }
 0x1f2   : > { %v548_v6 = vpop.permute.xlu1 %547 }
 0x1f3   : > { %v2802_v7 = vmul.f32 %v548_v6, %v541_v26  ;;  %v2804_v8 = vmul.f32 %v548_v6, %v415_v14  ;;  %v388_v26 = vadd.f32 %v380_v5, %v2732_v58 }
 0x1f4   : > { %v384_v9 = vpop.permute.xlu0 %383 }
 0x1f5   : > { %v390_v58 = vadd.f32 %v384_v9, %v2740_v62 }
 0x1f6   : > { %v552_v10 = vpop.permute.xlu1 %551 }
 0x1f7   : > { %v2806_v13 = vmul.f32 %v552_v10, %v543_v36  ;;  %v2808_v15 = vmul.f32 %v552_v10, %v417_v20  ;;  %v391_v36 = vmul.f32 2.0, %v388_v26  ;;  %v393_v48 = vmul.f32 2.0, %v390_v58 }
 0x1f8   : > { %v524_v16 = vpop.permute.xlu0 %523  ;;  %v2515_v26 = vmov 0  }
 0x1f9   : > { %v532_v38 = vadd.f32 %v524_v16, %v520_v28  ;;  %v394_v44 = vsub.f32 1.0, %v391_v36  ;;  %v396_v62 = vsub.f32 1.0, %v393_v48 }
 0x1fa   : > { %v382_v18 = vpop.permute.xlu1 %381 }
 0x1fb   : > { %v389_v37 = vadd.f32 %v382_v18, %v2728_v56  ;;  %v535_v47 = vmul.f32 2.0, %v532_v38  ;;  %v521_v56 = vmul.f32 %v2705_v49, %v2705_v49 }
 0x1fc   : > { %v528_v21 = vpop.permute.xlu0 %527 }
 0x1fd   : > { %v392_v45 = vmul.f32 2.0, %v389_v37  ;;  %v534_v32 = vadd.f32 %v528_v21, %v522_v31  ;;  %v538_v51 = vsub.f32 1.0, %v535_v47 }
 0x1fe   : > { %v526_v22 = vpop.permute.xlu1 %525 }
 0x1ff   : > { %v395_v50 = vsub.f32 1.0, %v392_v45  ;;  %v537_v53 = vmul.f32 2.0, %v534_v32  ;;  %v533_v54 = vadd.f32 %v526_v22, %v521_v56 }
 0x200   : > { %v607_v19 = vpop.permute.xlu0 %606 }
 0x201   : > { %v614_v55 = vadd.f32 %v607_v19, %v521_v56  ;;  %v540_v57 = vsub.f32 1.0, %v537_v53  ;;  %v536_v59 = vmul.f32 2.0, %v533_v54  ;;  %v637_v56 = vlaneseq }
 0x202   : > { %v605_v23 = vpop.permute.xlu1 %604 }
 0x203   : > { %v617_v46 = vmul.f32 2.0, %v614_v55  ;;  %v613_v5 = vadd.f32 %v605_v23, %v520_v28  ;;  %v539_v6 = vsub.f32 1.0, %v536_v59  ;;  %v2905_v48 = vshrl.u32 %v637_v56, 7  ;;  %v2916_v55 = vld [vmem:[%s240_s21] sm:$0xff] }
 0x204   : > { %v511_v24 = vpop.permute.xlu0 %510 }
 0x205   : > { %v518_v25 = vadd.f32 %v511_v24, %v2751_v12  ;;  %v620_v49 = vsub.f32 1.0, %v617_v46  ;;  %v616_v9 = vmul.f32 2.0, %v613_v5  ;;  %v661_v53 = vsub.s32 1, %v2905_v48 }
 0x206   : > { %v609_v27 = vpop.permute.xlu1 %608  ;;  %v2914_v54 = vsub.s32 0, %v2905_v48  ;;  %v686_v46 = vsub.s32 2, %v2905_v48 }
 0x207   : > { %719 = vperm.xlu1 %2374, %v518_v25   ;;  %v615_v10 = vadd.f32 %v609_v27, %v522_v31  ;;  %v619_v16 = vsub.f32 1.0, %v616_v9  ;;  %v2919_v59 = vrot.slane %v2916_v55, %v661_v53 }
 0x208   : > { %v2924_v5 = vrot.slane %v2916_v55, %v2914_v54  ;;  %v2929_v9 = vrot.slane %v2916_v55, %v686_v46 }
 0x209   : > { %v618_v18 = vmul.f32 2.0, %v615_v10 }
 0x20a   : > { %v509_v14 = vpop.permute.xlu1 %508 }
 0x20b   : > { %v517_v20 = vadd.f32 %v509_v14, %v2749_v11  ;;  %v621_v21 = vsub.f32 1.0, %v618_v18 }
 0x20d   : > { %714 = vperm.xlu0 %2373, %v517_v20  }
 0x20e   : > { %v513_v39 = vpop.permute.xlu1 %512 }
 0x20f   : > { %v519_v41 = vadd.f32 %v513_v39, %v2755_v17 }
 0x211   : > { %2375 = vset.pattern.permute.xlu0 %v2514_v52  ;;  %724 = vperm.xlu1 %2374, %v519_v41  }
 0x212   : > { %624 = vperm.xlu0 %2375, %v394_v44  }
 0x215   : > { %2376 = vset.pattern.permute.xlu1 %v2514_v52 }
 0x216   : > { %2377 = vset.pattern.permute.xlu0 %v2513_v60  ;;  %629 = vperm.xlu1 %2376, %v395_v50  }
 0x217   : > { %732 = vperm.xlu0 %2377, %v538_v51  }
 0x21a   : > { %634 = vperm.xlu1 %2376, %v396_v62  }
 0x21b   : > { %742 = vperm.xlu0 %2377, %v540_v57  }
 0x21e   : > { %2378 = vset.pattern.permute.xlu1 %v2513_v60 }
 0x21f   : > { %833 = vperm.xlu0 %2377, %v620_v49   ;;  %737 = vperm.xlu1 %2378, %v539_v6  }
 0x223   : > { %828 = vperm.xlu1 %2378, %v619_v16  }
 0x227   : > { %838 = vperm.xlu1 %2378, %v621_v21  }
 0x234   : > { %v437_v22 = vpop.permute.xlu1 %436 }
 0x235   : > { %v445_v19 = vsub.f32 %v2749_v11, %v437_v22 }
 0x237   : > { %646 = vperm.xlu0 %2377, %v445_v19  }
 0x238   : > { %v441_v25 = vpop.permute.xlu1 %440 }
 0x239   : > { %v439_v23 = vpop.permute.xlu0 %438  ;;  %v447_v60 = vsub.f32 %v2755_v17, %v441_v25 }
 0x23a   : > { %v446_v24 = vsub.f32 %v2751_v12, %v439_v23 }
 0x23b   : > { %2379 = vset.pattern.permute.xlu0 %v2515_v26 }
 0x23c   : > { %651 = vperm.xlu1 %2378, %v446_v24  }
 0x240   : > { %656 = vperm.xlu1 %2378, %v447_v60  }
 0x241   : > { %v476_v27 = vpop.permute.xlu0 %475 }
 0x242   : > { %v484_v14 = vadd.f32 %v476_v27, %v2768_v34  ;;  %v592_v34 = vadd.f32 %v2770_v35, %v476_v27 }
 0x244   : > { %671 = vperm.xlu0 %2379, %v484_v14   ;;  %2380 = vset.pattern.permute.xlu1 %v2515_v26  ;;  %v478_v28 = vpop.permute.xlu1 %477 }
 0x245   : > { %v480_v20 = vpop.permute.xlu0 %479  ;;  %v485_v11 = vadd.f32 %v478_v28, %v2764_v29 }
 0x246   : > { %v486_v12 = vadd.f32 %v480_v20, %v2773_v40  ;;  %v594_v17 = vadd.f32 %v2775_v30, %v480_v20  ;;  %v593_v40 = vadd.f32 %v2766_v33, %v478_v28 }
 0x247   : > { %676 = vperm.xlu1 %2380, %v485_v11  }
 0x249   : > { %v580_v36 = vpop.permute.xlu1 %579  ;;  %v578_v38 = vpop.permute.xlu0 %577 }
 0x24a   : > { %v587_v37 = vadd.f32 %v580_v36, %v2796_v63  ;;  %v586_v39 = vadd.f32 %v578_v38, %v2802_v7  ;;  %v599_v31 = vadd.f32 %v2798_v3, %v580_v36  ;;  %v598_v30 = vadd.f32 %v2804_v8, %v578_v38 }
 0x24b   : > { %681 = vperm.xlu1 %2380, %v486_v12   ;;  %v2516_v7 = vmov 6  }
 0x24c   : > { %758 = vperm.xlu0 %2379, %v587_v37  }
 0x24d   : > { %v582_v29 = vpop.permute.xlu0 %581 }
 0x24e   : > { %v588_v63 = vadd.f32 %v582_v29, %v2806_v13  ;;  %v600_v35 = vadd.f32 %v2808_v15, %v582_v29 }
 0x24f   : > { %753 = vperm.xlu1 %2380, %v586_v39  }
 0x250   : > { %799 = vperm.xlu0 %2379, %v594_v17  }
 0x253   : > { %789 = vperm.xlu1 %2380, %v592_v34  }
 0x254   : > { %812 = vperm.xlu0 %2379, %v599_v31  }
 0x257   : > { %794 = vperm.xlu1 %2380, %v593_v40  }
 0x258   : > { %763 = vperm.xlu0 %2379, %v588_v63  }
 0x25a   : > { %v2898_v33 = vpop.permute.xlu1 %781 }
 0x25b   : > { %807 = vperm.xlu1 %2380, %v598_v30  }
 0x25c   : > { %2382 = vset.pattern.permute.xlu0 %v2516_v7 }
 0x25d   : > { %852 = vperm.xlu0 %2382, %v2636_v2  }
 0x25e   : > { %v778_v8 = vpop.permute.xlu0 %777 }
 0x25f   : > { %817 = vperm.xlu1 %2380, %v600_v35  }
 0x261   : > { %867 = vrot.lane.b32.xlu0 %v2636_v2, %s2509_s29 }
 0x263   : > { %2381 = vset.pattern.permute.xlu1 %v2516_v7 }
 0x264   : > { %848 = vperm.xlu1 %2381, %v2634_v1  }
 0x268   : > { %856 = vperm.xlu1 %2381, %v2632_v0  }
 0x26c   : > { %865 = vrot.lane.b32.xlu1 %v2634_v1, %s2509_s29 }
 0x270   : > { %869 = vrot.lane.b32.xlu1 %v2632_v0, %s2509_s29  ;;  %s260_s29 = sadd.s32 7, %s2845_s5 }
 0x271   : > { %s2874_s8 = sld [smem:[#allocation4 + %s260_s29]]  ;;  %s274_s29 = sadd.s32 14, %s2845_s5 }
 0x272   : > { %s2896_s15 = sld [smem:[#allocation4 + %s274_s29]]  ;;  %s2517_s5 = smov (%p877_p9), 120  }
 0x286   : > { %v720_v3 = vpop.permute.xlu1 %719 }
 0x287   : > { %v728_v28 = vmul.f32 %v720_v3, %v2924_v5 }
 0x28c   : > { %v715_v15 = vpop.permute.xlu0 %714 }
 0x28d   : > { %v727_v31 = vmul.f32 %v715_v15, %v2924_v5 }
 0x290   : > { %v2900_v13 = vpop.permute.xlu1 %724 }
 0x291   : > { %v625_v44 = vpop.permute.xlu0 %624  ;;  %v729_v15 = vmul.f32 %v2900_v13, %v2924_v5 }
 0x292   : > { %v641_v49 = vmul.f32 %v2924_v5, %v625_v44 }
 0x295   : > { %v630_v41 = vpop.permute.xlu1 %629 }
 0x296   : > { %v733_v45 = vpop.permute.xlu0 %732  ;;  %v642_v19 = vmul.f32 %v2924_v5, %v630_v41 }
 0x297   : > { %v745_v36 = vmul.f32 %v733_v45, %v2919_v59 }
 0x299   : > { %v635_v58 = vpop.permute.xlu1 %634  ;;  %v748_v7 = vadd.f32 %v745_v36, %v727_v31  ;;  %v897_v31 = vstv (%p877_p9), %s2872_s9 }
 0x29a   : > { %v743_v32 = vpop.permute.xlu0 %742  ;;  %v643_v20 = vmul.f32 %v2924_v5, %v635_v58 }
 0x29b   : > { %v747_v45 = vmul.f32 %v743_v32, %v2919_v59 }
 0x29e   : > { %v738_v47 = vpop.permute.xlu1 %737  ;;  %v834_v50 = vpop.permute.xlu0 %833 }
 0x29f   : > { %v746_v24 = vmul.f32 %v738_v47, %v2919_v59  ;;  %v842_v46 = vmul.f32 %v834_v50, %v2929_v9 }
 0x2a1   : > { %v749_v12 = vadd.f32 %v746_v24, %v728_v28 }
 0x2a2   : > { %v2902_v52 = vpop.permute.xlu1 %828 }
 0x2a3   : > { %v841_v24 = vmul.f32 %v2902_v52, %v2929_v9 }
 0x2a6   : > { %v2907_v51 = vpop.permute.xlu1 %838 }
 0x2a7   : > { %v843_v28 = vmul.f32 %v2907_v51, %v2929_v9  ;;  %v881_v51 = vstv (%p877_p9), %s2862_s20 }
 0x2b6   : > { %v647_v62 = vpop.permute.xlu0 %646 }
 0x2b7   : > { %v663_v6 = vmul.f32 %v2919_v59, %v647_v62  ;;  %v750_v62 = vadd.f32 %v747_v45, %v729_v15  ;;  %v921_v45 = vstv (%p877_p9), %s2886_s23 }
 0x2b9   : > { %v666_v18 = vadd.f32 %v663_v6, %v641_v49 }
 0x2bb   : > { %v652_v57 = vpop.permute.xlu1 %651 }
 0x2bc   : > { %v664_v21 = vmul.f32 %v2919_v59, %v652_v57 }
 0x2be   : > { %v667_v26 = vadd.f32 %v664_v21, %v642_v19 }
 0x2bf   : > { %v657_v10 = vpop.permute.xlu1 %656 }
 0x2c0   : > { %v665_v60 = vmul.f32 %v2919_v59, %v657_v10 }
 0x2c2   : > { %v668_v17 = vadd.f32 %v665_v60, %v643_v20 }
 0x2c3   : > { %v672_v16 = vpop.permute.xlu0 %671 }
 0x2c4   : > { %v688_v22 = vmul.f32 %v2929_v9, %v672_v16 }
 0x2c6   : > { %v691_v23 = vadd.f32 %v688_v22, %v666_v18  ;;  %v677_v25 = vpop.permute.xlu1 %676 }
 0x2c7   : > { %v689_v14 = vmul.f32 %v2929_v9, %v677_v25 }
 0x2c8   : > { %v2937_v27 = vadd.f32 %v2792_v43, %v691_v23 }
 0x2c9   : > { %v692_v11 = vadd.f32 %v689_v14, %v667_v26 }
 0x2ca   : > { %v682_v37 = vpop.permute.xlu1 %681 }
 0x2cb   : > { %v759_v38 = vpop.permute.xlu0 %758  ;;  %v2944_v39 = vadd.f32 %v2790_v42, %v692_v11  ;;  %v690_v34 = vmul.f32 %v2929_v9, %v682_v37 }
 0x2cc   : > { %v767_v43 = vmul.f32 %v759_v38, %v2929_v9  ;;  %v889_v38 = vstv (%p877_p9), %s2868_s28 }
 0x2cd   : > { %v693_v29 = vadd.f32 %v690_v34, %v668_v17  ;;  %v882_v17 = vmul.f32 (%p877_p9), %v881_v51, %v2916_v55 }
 0x2ce   : > { %v770_v40 = vadd.f32 %v767_v43, %v749_v12  ;;  %v754_v63 = vpop.permute.xlu1 %753  ;;  %v890_v43 = vmul.f32 (%p877_p9), %v889_v38, %v2916_v55 }
 0x2cf   : > { %v800_v30 = vpop.permute.xlu0 %799  ;;  %v2950_v35 = vadd.f32 %v2794_v61, %v693_v29  ;;  %v766_v41 = vmul.f32 %v754_v63, %v2929_v9  ;;  %v898_v29 = vmul.f32 (%p877_p9), %v897_v31, %v2916_v55  ;;  %v905_v63 = vstv (%p877_p9), %s2878_s13 }
 0x2d0   : > { %v2952_v3 = vadd.f32 %v778_v8, %v770_v40  ;;  %v899_v40 = vstv (%p877_p9), %s2874_s8 }
 0x2d1   : > { %v769_v42 = vadd.f32 %v766_v41, %v748_v7  ;;  %v892_v7 = vrot.slane (%p877_p9), %v890_v43, 2  ;;  %v900_v41 = vmul.f32 (%p877_p9), %v899_v40, %v2916_v55 }
 0x2d2   : > { %v790_v44 = vpop.permute.xlu1 %789 }
 0x2d3   : > { %v813_v58 = vpop.permute.xlu0 %812  ;;  %v2957_v47 = vadd.f32 %v2800_v4, %v769_v42  ;;  %v802_v18 = vmul.f32 %v790_v44, %v2924_v5  ;;  %v906_v42 = vmul.f32 (%p877_p9), %v905_v63, %v2916_v55  ;;  %v913_v44 = vstv (%p877_p9), %s2880_s1 }
 0x2d4   : > { %v821_v61 = vmul.f32 %v813_v58, %v2919_v59  ;;  %v915_v58 = vstv (%p877_p9), %s2884_s22 }
 0x2d6   : > { %v795_v56 = vpop.permute.xlu1 %794 }
 0x2d7   : > { %v764_v53 = vpop.permute.xlu0 %763  ;;  %v803_v8 = vmul.f32 %v795_v56, %v2924_v5  ;;  %v902_v56 = vrot.slane (%p877_p9), %v900_v41, 1 }
 0x2d8   : > { %v768_v57 = vmul.f32 %v764_v53, %v2929_v9  ;;  %v883_v9 = vstv (%p877_p9), %s2866_s27  ;;  %v908_v53 = vrot.slane (%p877_p9), %v906_v42, 2 }
 0x2d9   : > { %v824_v6 = vadd.f32 %v821_v61, %v803_v8  ;;  %v884_v34 = vmul.f32 (%p877_p9), %v883_v9, %v2916_v55  ;;  %v914_v61 = vmul.f32 (%p877_p9), %v913_v44, %v2916_v55  ;;  %v916_v8 = vmul.f32 (%p877_p9), %v915_v58, %v2916_v55 }
 0x2da   : > { %v771_v49 = vadd.f32 %v768_v57, %v750_v62  ;;  %v808_v32 = vpop.permute.xlu1 %807  ;;  %v895_v62 = vstv (%p877_p9), %s2890_s26  ;;  %v922_v57 = vmul.f32 (%p877_p9), %v921_v45, %v2916_v55  ;;  %v988_v45 = vsub.s32 (%p877_p9), 3, %v2905_v48 }
 0x2db   : > { %v820_v10 = vmul.f32 %v808_v32, %v2919_v59  ;;  %v845_v13 = vadd.f32 %v842_v46, %v824_v6  ;;  %v904_v6 = vadd.f32 (%p877_p9), %v902_v56, %v898_v29  ;;  %v918_v32 = vrot.slane (%p877_p9), %v916_v8, 1 }
 0x2dc   : > { %v2966_v4 = vadd.f32 %v2898_v33, %v771_v49  ;;  %v853_v16 = vpop.permute.xlu0 %852  ;;  %v804_v33 = vmul.f32 %v800_v30, %v2924_v5  ;;  %v886_v30 = vrot.slane (%p877_p9), %v884_v34, 1  ;;  %v911_v49 = vstv (%p877_p9), %s2892_s30 }
 0x2dd   : > { %v2970_v21 = vadd.f32 %v853_v16, %v845_v13  ;;  %v823_v22 = vadd.f32 %v820_v10, %v802_v18  ;;  %v924_v10 = vrot.slane (%p877_p9), %v922_v57, 2  ;;  %v910_v16 = vadd.f32 (%p877_p9), %v908_v53, %v904_v6 }
 0x2de   : > { %v818_v19 = vpop.permute.xlu1 %817  ;;  %v888_v15 = vadd.f32 (%p877_p9), %v886_v30, %v882_v17  ;;  %v920_v18 = vadd.f32 (%p877_p9), %v918_v32, %v914_v61  ;;  %v989_v53 = vrot.slane (%p877_p9), %v2916_v55, %v988_v45 }
 0x2df   : > { %v822_v50 = vmul.f32 %v818_v19, %v2919_v59  ;;  %v844_v60 = vadd.f32 %v841_v24, %v823_v22  ;;  %v912_v22 = vadd.f32 (%p877_p9), %v911_v49, %v910_v16  ;;  %v927_v19 = vstv (%p877_p9), %s2896_s15 }
 0x2e0   : > { %v868_v23 = vpop.permute.xlu0 %867  ;;  %v894_v46 = vadd.f32 (%p877_p9), %v892_v7, %v888_v15 }
 0x2e1   : > { %v2979_v25 = vsel %vm863_vm0, %v868_v23, 1.0  ;;  %v825_v26 = vadd.f32 %v822_v50, %v804_v33  ;;  %v926_v23 = vadd.f32 (%p877_p9), %v924_v10, %v920_v18  ;;  %v939_v33 = vrot.slane (%p877_p9), %v912_v22, %v2914_v54 }
 0x2e2   : > { %v896_v13 = vadd.f32 (%p877_p9), %v895_v62, %v894_v46 }
 0x2e3   : > { %v849_v14 = vpop.permute.xlu1 %848  ;;  %v846_v59 = vadd.f32 %v843_v28, %v825_v26  ;;  %v940_v28 = vsub.f32 (%p877_p9), %v2957_v47, %v939_v33  ;;  %v942_v51 = vsub.f32 (%p877_p9), %v2966_v4, %v939_v33 }
 0x2e4   : > { %v2983_v20 = vadd.f32 %v849_v14, %v844_v60  ;;  %v932_v50 = vrot.slane (%p877_p9), %v896_v13, %v2914_v54  ;;  %v928_v14 = vadd.f32 (%p877_p9), %v927_v19, %v926_v23 }
 0x2e5   : > { %v953_v38 = vmul.f32 (%p877_p9), %v940_v28, %v940_v28  ;;  %v955_v29 = vmul.f32 (%p877_p9), %v942_v51, %v942_v51 }
 0x2e6   : > { %v933_v24 = vsub.f32 (%p877_p9), %v2937_v27, %v932_v50  ;;  %v934_v26 = vsub.f32 (%p877_p9), %v2944_v39, %v932_v50  ;;  %v935_v60 = vsub.f32 (%p877_p9), %v2950_v35, %v932_v50 }
 0x2e7   : > { %v857_v11 = vpop.permute.xlu1 %856 }
 0x2e8   : > { %v2985_v36 = vadd.f32 %v857_v11, %v846_v59  ;;  %v950_v59 = vmul.f32 (%p877_p9), %v933_v24, %v933_v24  ;;  %v941_v11 = vsub.f32 (%p877_p9), %v2952_v3, %v939_v33  ;;  %v952_v9 = vmul.f32 (%p877_p9), %v935_v60, %v935_v60 }
 0x2ea   : > { %880 = sbr.rel (!%p877_p9) target bundleno = 1261 (0x4ed), region = 44  ;;  %v954_v17 = vmul.f32 (%p877_p9), %v941_v11, %v941_v11  ;;  %v956_v40 = vadd.f32 (%p877_p9), %v953_v38, %v950_v59  ;;  %v958_v41 = vadd.f32 (%p877_p9), %v955_v29, %v952_v9 }
 0x2eb   : > { %v866_v52 = vpop.permute.xlu1 %865 }
 0x2ec   : > { %v2990_v5 = vsel %vm862_vm1, %v866_v52, 1.0  ;;  %v951_v52 = vmul.f32 (%p877_p9), %v934_v26, %v934_v26 }
 0x2ee   : > { %v957_v63 = vadd.f32 (%p877_p9), %v954_v17, %v951_v52 }
 0x2ef   : > { %v870_v12 = vpop.permute.xlu1 %869 }
 0x2f0   : > { %v2995_v37 = vsel %vm864_vm2, %v870_v12, 1.0  ;;  %v946_v12 = vrot.slane (%p877_p9), %v928_v14, %v2914_v54 }
 0x2f2   : > { %v947_v34 = vsub.f32 %v2983_v20, %v946_v12  ;;  %v948_v43 = vsub.f32 %v2970_v21, %v946_v12  ;;  %v949_v31 = vsub.f32 %v2985_v36, %v946_v12 }
 0x2f4   : > { %v959_v30 = vmul.f32 %v947_v34, %v947_v34  ;;  %v960_v7 = vmul.f32 %v948_v43, %v948_v43  ;;  %v961_v42 = vmul.f32 %v949_v31, %v949_v31 }
 0x2f6   : > { %v962_v44 = vadd.f32 %v959_v30, %v956_v40  ;;  %v963_v54 = vadd.f32 %v960_v7, %v957_v63  ;;  %v964_v58 = vadd.f32 %v961_v42, %v958_v41 }
 0x2f8   : > { %2389 = vrsqrt.f32 %v962_v44  ;;  %vm967_vm3 = vcmp.eq.f32.partialorder %v962_v44, inf  ;;  %v970_v56 = vand.u32 2147483648, %v962_v44  ;;  %vm969_vm4 = vcmp.eq.f32.partialorder %v962_v44, 0.0 }
 0x2f9   : > { %2391 = vrsqrt.f32 %v963_v54  ;;  %vm974_vm5 = vcmp.eq.f32.partialorder %v963_v54, inf  ;;  %v977_v8 = vand.u32 2147483648, %v963_v54  ;;  %vm976_vm6 = vcmp.eq.f32.partialorder %v963_v54, 0.0 }
 0x2fa   : > { %2393 = vrsqrt.f32 %v964_v58  ;;  %vm981_vm7 = vcmp.eq.f32.partialorder %v964_v58, inf  ;;  %v984_v6 = vand.u32 2147483648, %v964_v58  ;;  %vm983_vm8 = vcmp.eq.f32.partialorder %v964_v58, 0.0 }
 0x2fb   : > { %2395 = vlog2.f32 %v2990_v5 }
 0x2fc   : > { %2397 = vlog2.f32 %v2995_v37 }
 0x2fd   : > { %2399 = vlog2.f32 %v2979_v25 }
 0x302   : > { %v2390_v15 = vpop.eup %2389 }
 0x303   : > { %v2392_v62 = vpop.eup %2391  ;;  %v966_v61 = vmul.f32 %v2390_v15, %v962_v44 }
 0x304   : > { %v2394_v57 = vpop.eup %2393  ;;  %v973_v46 = vmul.f32 %v2392_v62, %v963_v54 }
 0x305   : > { %v968_v49 = vsel %vm967_vm3, %v962_v44, %v966_v61  ;;  %v980_v32 = vmul.f32 %v2394_v57, %v964_v58  ;;  %v2396_v24 = vpop.eup %2395 }
 0x306   : > { %v971_v10 = vsel %vm969_vm4, %v970_v56, %v968_v49  ;;  %v975_v13 = vsel %vm974_vm5, %v963_v54, %v973_v46  ;;  %v2398_v33 = vpop.eup %2397  ;;  %v1006_v26 = vmul.f32 0.6931472, %v2396_v24 }
 0x307   : > { %v990_v16 = vmul.f32 %v989_v53, %v971_v10  ;;  %v978_v18 = vsel %vm976_vm6, %v977_v8, %v975_v13  ;;  %v982_v22 = vsel %vm981_vm7, %v964_v58, %v980_v32  ;;  %v2400_v60 = vpop.eup %2399  ;;  %v1010_v14 = vmul.f32 0.6931472, %v2398_v33 }
 0x308   : > { %v985_v19 = vsel %vm983_vm8, %v984_v6, %v982_v22  ;;  %v991_v50 = vmul.f32 %v989_v53, %v978_v18  ;;  %v1011_v11 = vmul.f32 0.01, %v1006_v26  ;;  %v1008_v52 = vmul.f32 0.6931472, %v2400_v60 }
 0x309   : > { %993 = vadd.xlane.f32.xlu0 %v990_v16  ;;  %v992_v23 = vmul.f32 %v989_v53, %v985_v19  ;;  %v1013_v17 = vmul.f32 0.01, %v1010_v14 }
 0x30a   : > { %v1012_v40 = vmul.f32 0.01, %v1008_v52 }
 0x30b   : > { %997 = vadd.xlane.f32.xlu1 %v992_v23 }
 0x30d   : > { %995 = vadd.xlane.f32.xlu0 %v991_v50 }
 0x396   : > { %v994_v28 = vpop.xlane.xlu0 %993 }
 0x397   : > { %v999_v59 = vmul.f32 0.015625, %v994_v28 }
 0x398   : > { %v998_v12 = vpop.xlane.xlu1 %997 }
 0x399   : > { %v1002_v51 = vmul.f32 %v999_v59, %v2990_v5  ;;  %v1017_v9 = vsel %vm862_vm1, %v999_v59, 0.0  ;;  %v1001_v38 = vmul.f32 0.015625, %v998_v12 }
 0x39a   : > { %1023 = vrot.lane.b32.xlu1 %v1017_v9, %s2517_s5  ;;  %v996_v34 = vpop.xlane.xlu0 %995 }
 0x39b   : > { %v1000_v43 = vmul.f32 0.015625, %v996_v34  ;;  %v1004_v31 = vmul.f32 %v1001_v38, %v2995_v37  ;;  %v1014_v29 = vsub.f32 %v1002_v51, %v1011_v11  ;;  %v1019_v58 = vsel %vm864_vm2, %v1001_v38, 0.0 }
 0x39c   : > { %v1079_v51 = vstv %s1078_s11 }
 0x39d   : > { %v1003_v63 = vmul.f32 %v1000_v43, %v2979_v25  ;;  %v1048_v30 = vsel %vm862_vm1, %v1014_v29, 0.0  ;;  %v1018_v7 = vsel %vm863_vm0, %v1000_v43, 0.0  ;;  %v1016_v41 = vsub.f32 %v1004_v31, %v1013_v17 }
 0x39e   : > { %1054 = vrot.lane.b32.xlu1 %v1048_v30, %s2517_s5  ;;  %1025 = vrot.lane.b32.xlu0 %v1018_v7, %s2517_s5 }
 0x39f   : > { %v1015_v42 = vsub.f32 %v1003_v63, %v1012_v40  ;;  %v1050_v44 = vsel %vm864_vm2, %v1016_v41, 0.0 }
 0x3a1   : > { %v1049_v54 = vsel %vm863_vm0, %v1015_v42, 0.0 }
 0x3a2   : > { %1056 = vrot.lane.b32.xlu1 %v1049_v54, %s2517_s5  ;;  %1058 = vrot.lane.b32.xlu0 %v1050_v44, %s2517_s5 }
 0x3a6   : > { %1027 = vrot.lane.b32.xlu1 %v1019_v58, %s2517_s5 }
 0x40c   : > { %v1024_v45 = vpop.permute.xlu1 %1023 }
 0x40d   : > { %v1033_v49 = vsel %vm1032_vm9, %v1024_v45, 0.0 }
 0x410   : > { %v1055_v15 = vpop.permute.xlu1 %1054  ;;  %v1026_v56 = vpop.permute.xlu0 %1025 }
 0x411   : > { %v1063_v61 = vsel %vm1032_vm9, %v1055_v15, 0.0  ;;  %v1034_v8 = vsel %vm1032_vm9, %v1026_v56, 0.0 }
 0x412   : > { %v1035_v32 = vadd.f32 %v1034_v8, %v1033_v49 }
 0x414   : > { %v1057_v53 = vpop.permute.xlu1 %1056  ;;  %v1059_v62 = vpop.permute.xlu0 %1058 }
 0x415   : > { %v1064_v57 = vsel %vm1032_vm9, %v1057_v53, 0.0  ;;  %v1066_v46 = vsel %vm1032_vm9, %v1059_v62, 0.0 }
 0x416   : > { %v1065_v6 = vadd.f32 %v1064_v57, %v1063_v61 }
 0x418   : > { %v1028_v10 = vpop.permute.xlu1 %1027  ;;  %v1067_v13 = vadd.f32 %v1066_v46, %v1065_v6 }
 0x419   : > { %v1036_v16 = vsel %vm1032_vm9, %v1028_v10, 0.0 }
 0x41a   : > { %1068 = vadd.xlane.f32.xlu0 %v1067_v13  ;;  %v1037_v18 = vadd.f32 %v1036_v16, %v1035_v32 }
 0x41c   : > { %1038 = vadd.xlane.f32.xlu1 %v1037_v18 }
 0x4a7   : > { %v1069_v22 = vpop.xlane.xlu0 %1068 }
 0x4a8   : > { %v1070_v19 = vrot.slane %v1069_v22, 4 }
 0x4a9   : > { %v1039_v50 = vpop.xlane.xlu1 %1038 }
 0x4aa   : > { %v1071_v23 = vadd.f32 %v1070_v19, %v1069_v22  ;;  %v1040_v24 = vrot.slane %v1039_v50, 4 }
 0x4ac   : > { %v1072_v33 = vrot.slane %v1071_v23, 2  ;;  %v1041_v26 = vadd.f32 %v1040_v24, %v1039_v50 }
 0x4ae   : > { %v1073_v60 = vadd.f32 %v1072_v33, %v1071_v23  ;;  %v1042_v14 = vrot.slane %v1041_v26, 2 }
 0x4b0   : > { %v1043_v28 = vadd.f32 %v1042_v14, %v1041_v26  ;;  %v1074_v59 = vrot.slane %v1073_v60, 1 }
 0x4b2   : > { %v1044_v11 = vrot.slane %v1043_v28, 1  ;;  %v1075_v12 = vadd.f32 %v1074_v59, %v1073_v60 }
 0x4b4   : > { %v1045_v52 = vadd.f32 %v1044_v11, %v1043_v28 }
 0x4b6   : > { %2276 = vpush %v1045_v52 }
 0x4b7   : > { %2278 = vpush %v1075_v12 }
 0x4e7   : > { %s2277_s29 = spop %2276 }
 0x4e8   : > { %v1047_v9 = vstv %s2277_s29  ;;  %s2279_s0 = spop %2278 }
 0x4e9   : > { %v1080_v38 = vmul.f32 %v1079_v51, %v1047_v9  ;;  %v1077_v17 = vstv %s2279_s0 }
 0x4ea   : > { %v1083_v34 = vmul.f32 %v1079_v51, %v1077_v17 }
 0x4eb   : > { %1082 = vst.msk [vmem:[%s2999_s7] sm:$0x1] %vm1081_vm10, %v1080_v38 }
 0x4ec   : > { %1085 = vst.msk [vmem:[%s2999_s7] sm:$0x1] %vm1084_vm11, %v1083_v34 }
 0x4ed PF: > { %p1086_p10 = scmp.gt.f32.partialorder %s2850_s6, 0.5 }
 0x4ee   : > { %v3062_v43 = vld [vmem:[%s2627_s12 + $0x10] sm:$0xff] (%p1086_p10)  ;;  %v1123_v31 = vstv (%p1086_p10), %s2866_s27  ;;  %v3066_v29 = vld [vmem:[%s2627_s12] sm:$0xff] (%p1086_p10)  ;;  %v3069_v40 = vld [vmem:[%s2627_s12 + $0x18] sm:$0xff] (%p1086_p10)  ;;  %s2518_s6 = smov (%p1086_p10), 127   ;;  %s2519_s27 = smov (%p1086_p10), 126   ;;  %vm1334_vm12 = vcmask (%p1086_p10), 7168  }
 0x4ef   : > { %1089 = sbr.rel (!%p1086_p10) target bundleno = 2477 (0x9ad), region = 48  ;;  %v1126_v63 = vmul.f32 (%p1086_p10), %v1123_v31, %v3062_v43  ;;  %v1124_v30 = vmul.f32 (%p1086_p10), %v1123_v31, %v3066_v29  ;;  %v3074_v7 = vld [vmem:[%s2627_s12 + $0x8] sm:$0xff] (%p1086_p10)  ;;  %v1127_v41 = vmul.f32 (%p1086_p10), %v1123_v31, %v3069_v40  ;;  %v3084_v54 = vld [vmem:[%s2627_s12 + $0x20] sm:$0xff] (%p1086_p10)  ;;  %v3091_v15 = vld [vmem:[%s2627_s12 + $0x38] sm:$0xff] (%p1086_p10)  ;;  %v1220_v33 = vstv (%p1086_p10), %s2868_s28 }
 0x4f0   : > { %v1125_v42 = vmul.f32 (%p1086_p10), %v1123_v31, %v3074_v7  ;;  %v3081_v44 = vld [vmem:[%s2627_s12 + $0x28] sm:$0xff] (%p1086_p10)  ;;  %v1128_v45 = vmul.f32 (%p1086_p10), %v1123_v31, %v3084_v54  ;;  %v3094_v56 = vld [vmem:[%s2627_s12 + $0x30] sm:$0xff] (%p1086_p10)  ;;  %v1131_v53 = vmul.f32 (%p1086_p10), %v1123_v31, %v3091_v15  ;;  %v3104_v8 = vld [vmem:[%s2627_s12 + $0x40] sm:$0xff] (%p1086_p10)  ;;  %v1222_v26 = vmul.f32 (%p1086_p10), %v1220_v33, %v3074_v7 }
 0x4f1   : > { %1160 = vrot.lane.b32.xlu1 (%p1086_p10), %v1126_v63, %s2518_s6  ;;  %1156 = vrot.lane.b32.xlu0 (%p1086_p10), %v1124_v30, %s2518_s6  ;;  %v1129_v58 = vmul.f32 (%p1086_p10), %v1123_v31, %v3081_v44  ;;  %v1130_v62 = vmul.f32 (%p1086_p10), %v1123_v31, %v3094_v56  ;;  %v3101_v61 = vld [vmem:[%s2627_s12 + $0x48] sm:$0xff] (%p1086_p10)  ;;  %v1132_v46 = vmul.f32 (%p1086_p10), %v1123_v31, %v3104_v8  ;;  %v3111_v6 = vld [vmem:[%s2627_s12 + $0x58] sm:$0xff] (%p1086_p10)  ;;  %vm1643_vm13 = vcmask (%p1086_p10), 15368  }
 0x4f2   : > { %v1133_v57 = vmul.f32 (%p1086_p10), %v1123_v31, %v3101_v61  ;;  %v3114_v49 = vld [vmem:[%s2627_s12 + $0x50] sm:$0xff] (%p1086_p10)  ;;  %v1135_v32 = vmul.f32 (%p1086_p10), %v1123_v31, %v3111_v6  ;;  %v3121_v13 = vld [vmem:[%s2627_s12 + $0x68] sm:$0xff] (%p1086_p10)  ;;  %v3124_v16 = vld [vmem:[%s2627_s12 + $0x60] sm:$0xff] (%p1086_p10)  ;;  %v1221_v60 = vmul.f32 (%p1086_p10), %v1220_v33, %v3066_v29  ;;  %v1224_v14 = vmul.f32 (%p1086_p10), %v1220_v33, %v3069_v40 }
 0x4f3   : > { %v1134_v10 = vmul.f32 (%p1086_p10), %v1123_v31, %v3114_v49  ;;  %v1137_v18 = vmul.f32 (%p1086_p10), %v1123_v31, %v3121_v13  ;;  %v1136_v22 = vmul.f32 (%p1086_p10), %v1123_v31, %v3124_v16  ;;  %v3131_v19 = vld [vmem:[%s2627_s12 + $0x78] sm:$0xff] (%p1086_p10)  ;;  %v3134_v50 = vld [vmem:[%s2627_s12 + $0x70] sm:$0xff] (%p1086_p10)  ;;  %v1223_v28 = vmul.f32 (%p1086_p10), %v1220_v33, %v3062_v43 }
 0x4f4   : > { %v1139_v23 = vmul.f32 (%p1086_p10), %v1123_v31, %v3131_v19  ;;  %v1138_v24 = vmul.f32 (%p1086_p10), %v1123_v31, %v3134_v50  ;;  %v1226_v59 = vmul.f32 (%p1086_p10), %v1220_v33, %v3081_v44  ;;  %v1225_v11 = vmul.f32 (%p1086_p10), %v1220_v33, %v3084_v54 }
 0x4f5   : > { %1162 = vrot.lane.b32.xlu1 (%p1086_p10), %v1127_v41, %s2518_s6  ;;  %1158 = vrot.lane.b32.xlu0 (%p1086_p10), %v1125_v42, %s2518_s6  ;;  %v1228_v52 = vmul.f32 (%p1086_p10), %v1220_v33, %v3091_v15  ;;  %v1227_v12 = vmul.f32 (%p1086_p10), %v1220_v33, %v3094_v56  ;;  %v1230_v51 = vmul.f32 (%p1086_p10), %v1220_v33, %v3101_v61  ;;  %v1368_v41 = vstv (%p1086_p10), %s2874_s8 }
 0x4f6   : > { %v1229_v9 = vmul.f32 %v1220_v33, %v3104_v8  ;;  %v1232_v38 = vmul.f32 %v1220_v33, %v3111_v6  ;;  %v1231_v17 = vmul.f32 %v1220_v33, %v3114_v49  ;;  %v1234_v34 = vmul.f32 %v1220_v33, %v3121_v13 }
 0x4f7   : > { %v1233_v31 = vmul.f32 %v1220_v33, %v3124_v16  ;;  %v1236_v63 = vmul.f32 %v1220_v33, %v3131_v19  ;;  %v1235_v30 = vmul.f32 %v1220_v33, %v3134_v50  ;;  %v1370_v42 = vmul.f32 %v1368_v41, %v3074_v7 }
 0x4f8   : > { %v1381_v33 = vmul.f32 %v1368_v41, %v3124_v16  ;;  %vm1952_vm14 = vcmask 23568  }
 0x4f9   : > { %1166 = vrot.lane.b32.xlu1 %v1129_v58, %s2518_s6  ;;  %1164 = vrot.lane.b32.xlu0 %v1128_v45, %s2518_s6  ;;  %v1369_v58 = vmul.f32 %v1368_v41, %v3066_v29  ;;  %v1372_v45 = vmul.f32 %v1368_v41, %v3069_v40 }
 0x4fd   : > { %1170 = vrot.lane.b32.xlu1 %v1131_v53, %s2518_s6  ;;  %1168 = vrot.lane.b32.xlu0 %v1130_v62, %s2518_s6  ;;  %v1371_v53 = vmul.f32 %v1368_v41, %v3062_v43  ;;  %v1374_v62 = vmul.f32 %v1368_v41, %v3081_v44 }
 0x501   : > { %1174 = vrot.lane.b32.xlu1 %v1133_v57, %s2518_s6  ;;  %1172 = vrot.lane.b32.xlu0 %v1132_v46, %s2518_s6  ;;  %v1373_v57 = vmul.f32 %v1368_v41, %v3084_v54  ;;  %v1376_v46 = vmul.f32 %v1368_v41, %v3091_v15 }
 0x505   : > { %1178 = vrot.lane.b32.xlu1 %v1135_v32, %s2518_s6  ;;  %1176 = vrot.lane.b32.xlu0 %v1134_v10, %s2518_s6  ;;  %v1375_v32 = vmul.f32 %v1368_v41, %v3094_v56  ;;  %v1378_v10 = vmul.f32 %v1368_v41, %v3101_v61 }
 0x509   : > { %1182 = vrot.lane.b32.xlu1 %v1137_v18, %s2518_s6  ;;  %1180 = vrot.lane.b32.xlu0 %v1136_v22, %s2518_s6  ;;  %v1377_v18 = vmul.f32 %v1368_v41, %v3104_v8  ;;  %v1380_v22 = vmul.f32 %v1368_v41, %v3111_v6 }
 0x50d   : > { %1186 = vrot.lane.b32.xlu1 %v1139_v23, %s2518_s6  ;;  %1184 = vrot.lane.b32.xlu0 %v1138_v24, %s2518_s6  ;;  %v1379_v23 = vmul.f32 %v1368_v41, %v3114_v49  ;;  %v1382_v24 = vmul.f32 %v1368_v41, %v3121_v13 }
 0x511   : > { %1255 = vrot.lane.b32.xlu1 %v1222_v26, %s2519_s27  ;;  %1253 = vrot.lane.b32.xlu0 %v1221_v60, %s2519_s27  ;;  %v1384_v26 = vmul.f32 %v1368_v41, %v3131_v19  ;;  %v1383_v60 = vmul.f32 %v1368_v41, %v3134_v50 }
 0x515   : > { %1259 = vrot.lane.b32.xlu1 %v1224_v14, %s2519_s27  ;;  %1257 = vrot.lane.b32.xlu0 %v1223_v28, %s2519_s27  ;;  %v1465_v14 = vstv %s2878_s13 }
 0x516   : > { %v1467_v28 = vmul.f32 %v1465_v14, %v3074_v7 }
 0x519   : > { %1263 = vrot.lane.b32.xlu1 %v1226_v59, %s2519_s27  ;;  %1261 = vrot.lane.b32.xlu0 %v1225_v11, %s2519_s27  ;;  %v1466_v59 = vmul.f32 %v1465_v14, %v3066_v29  ;;  %v1469_v11 = vmul.f32 %v1465_v14, %v3069_v40 }
 0x51d   : > { %1267 = vrot.lane.b32.xlu1 %v1228_v52, %s2519_s27  ;;  %1265 = vrot.lane.b32.xlu0 %v1227_v12, %s2519_s27  ;;  %v1468_v52 = vmul.f32 %v1465_v14, %v3062_v43  ;;  %v1471_v12 = vmul.f32 %v1465_v14, %v3081_v44 }
 0x521   : > { %1271 = vrot.lane.b32.xlu1 %v1230_v51, %s2519_s27  ;;  %1269 = vrot.lane.b32.xlu0 %v1229_v9, %s2519_s27  ;;  %v1470_v51 = vmul.f32 %v1465_v14, %v3084_v54  ;;  %v1473_v9 = vmul.f32 %v1465_v14, %v3091_v15 }
 0x525   : > { %1275 = vrot.lane.b32.xlu1 %v1232_v38, %s2519_s27  ;;  %1273 = vrot.lane.b32.xlu0 %v1231_v17, %s2519_s27  ;;  %v1472_v38 = vmul.f32 %v1465_v14, %v3094_v56  ;;  %v1475_v17 = vmul.f32 %v1465_v14, %v3101_v61 }
 0x529   : > { %1279 = vrot.lane.b32.xlu1 %v1234_v34, %s2519_s27  ;;  %1277 = vrot.lane.b32.xlu0 %v1233_v31, %s2519_s27  ;;  %v1474_v34 = vmul.f32 %v1465_v14, %v3104_v8  ;;  %v1477_v31 = vmul.f32 %v1465_v14, %v3111_v6 }
 0x52d   : > { %1283 = vrot.lane.b32.xlu1 %v1236_v63, %s2519_s27  ;;  %1281 = vrot.lane.b32.xlu0 %v1235_v30, %s2519_s27  ;;  %v1476_v63 = vmul.f32 %v1465_v14, %v3114_v49 }
 0x531   : > { %1403 = vrot.lane.b32.xlu1 %v1370_v42, %s2518_s6  ;;  %1401 = vrot.lane.b32.xlu0 %v1369_v58, %s2518_s6  ;;  %v1479_v42 = vmul.f32 %v1465_v14, %v3121_v13  ;;  %v1478_v58 = vmul.f32 %v1465_v14, %v3124_v16 }
 0x535   : > { %1407 = vrot.lane.b32.xlu1 %v1372_v45, %s2518_s6  ;;  %1405 = vrot.lane.b32.xlu0 %v1371_v53, %s2518_s6 }
 0x539   : > { %1411 = vrot.lane.b32.xlu1 %v1374_v62, %s2518_s6  ;;  %1409 = vrot.lane.b32.xlu0 %v1373_v57, %s2518_s6  ;;  %v1481_v62 = vmul.f32 %v1465_v14, %v3131_v19  ;;  %v1480_v57 = vmul.f32 %v1465_v14, %v3134_v50 }
 0x53d   : > { %1415 = vrot.lane.b32.xlu1 %v1376_v46, %s2518_s6  ;;  %1413 = vrot.lane.b32.xlu0 %v1375_v32, %s2518_s6 }
 0x541   : > { %1419 = vrot.lane.b32.xlu1 %v1378_v10, %s2518_s6  ;;  %1417 = vrot.lane.b32.xlu0 %v1377_v18, %s2518_s6 }
 0x545   : > { %1423 = vrot.lane.b32.xlu1 %v1380_v22, %s2518_s6  ;;  %1421 = vrot.lane.b32.xlu0 %v1379_v23, %s2518_s6 }
 0x549   : > { %1427 = vrot.lane.b32.xlu1 %v1382_v24, %s2518_s6  ;;  %1425 = vrot.lane.b32.xlu0 %v1381_v33, %s2518_s6 }
 0x54d   : > { %1431 = vrot.lane.b32.xlu1 %v1384_v26, %s2518_s6  ;;  %1429 = vrot.lane.b32.xlu0 %v1383_v60, %s2518_s6  ;;  %v3246_v26 = vstv %s2862_s20 }
 0x551   : > { %1500 = vrot.lane.b32.xlu1 %v1467_v28, %s2519_s27  ;;  %1498 = vrot.lane.b32.xlu0 %v1466_v59, %s2519_s27  ;;  %v1107_v28 = vmul.f32 %v3246_v26, %v3066_v29  ;;  %v1108_v59 = vmul.f32 %v3246_v26, %v3074_v7 }
 0x555   : > { %1504 = vrot.lane.b32.xlu1 %v1469_v11, %s2519_s27  ;;  %1502 = vrot.lane.b32.xlu0 %v1468_v52, %s2519_s27 }
 0x559   : > { %1508 = vrot.lane.b32.xlu1 %v1471_v12, %s2519_s27  ;;  %1506 = vrot.lane.b32.xlu0 %v1470_v51, %s2519_s27  ;;  %v1109_v12 = vmul.f32 %v3246_v26, %v3062_v43 }
 0x55d   : > { %1512 = vrot.lane.b32.xlu1 %v1473_v9, %s2519_s27  ;;  %1510 = vrot.lane.b32.xlu0 %v1472_v38, %s2519_s27  ;;  %v1110_v9 = vmul.f32 %v3246_v26, %v3069_v40 }
 0x561   : > { %1516 = vrot.lane.b32.xlu1 %v1475_v17, %s2519_s27  ;;  %1514 = vrot.lane.b32.xlu0 %v1474_v34, %s2519_s27  ;;  %v3265_v17 = vstv %s2890_s26  ;;  %s2520_s26 = smov 1  }
 0x563   : > { %v1161_v30 = vpop.permute.xlu1 %1160  ;;  %v1157_v41 = vpop.permute.xlu0 %1156 }
 0x564   : > { %v1204_v51 = vadd.f32 %v1157_v41, %v1107_v28 }
 0x565   : > { %1520 = vrot.lane.b32.xlu1 %v1477_v31, %s2519_s27  ;;  %1518 = vrot.lane.b32.xlu0 %v1476_v63, %s2519_s27 }
 0x567   : > { %v1163_v45 = vpop.permute.xlu1 %1162  ;;  %v1159_v53 = vpop.permute.xlu0 %1158 }
 0x568   : > { %v1205_v38 = vadd.f32 %v1159_v53, %v1108_v59  ;;  %v1207_v0 = vadd.f32 %v1163_v45, %v1110_v9 }
 0x569   : > { %1524 = vrot.lane.b32.xlu1 %v1479_v42, %s2519_s27  ;;  %1522 = vrot.lane.b32.xlu0 %v1478_v58, %s2519_s27  ;;  %v1112_v58 = vmul.f32 %v3246_v26, %v3081_v44 }
 0x56b   : > { %v1167_v46 = vpop.permute.xlu1 %1166  ;;  %v1165_v32 = vpop.permute.xlu0 %1164 }
 0x56d   : > { %1528 = vrot.lane.b32.xlu1 %v1481_v62, %s2519_s27  ;;  %1526 = vrot.lane.b32.xlu0 %v1480_v57, %s2519_s27  ;;  %v1111_v62 = vmul.f32 %v3246_v26, %v3084_v54  ;;  %v1206_v57 = vadd.f32 %v1161_v30, %v1109_v12  ;;  %v1209_v30 = vadd.f32 %v1167_v46, %v1112_v58 }
 0x56f   : > { %v1171_v10 = vpop.permute.xlu1 %1170  ;;  %v1169_v18 = vpop.permute.xlu0 %1168  ;;  %v1208_v45 = vadd.f32 %v1165_v32, %v1111_v62 }
 0x573   : > { %v1175_v22 = vpop.permute.xlu1 %1174  ;;  %v1173_v23 = vpop.permute.xlu0 %1172 }
 0x577   : > { %v3241_v24 = vpop.permute.xlu1 %1178  ;;  %v3243_v33 = vpop.permute.xlu0 %1176 }
 0x57b   : > { %v3248_v60 = vpop.permute.xlu1 %1182  ;;  %v3250_v14 = vpop.permute.xlu0 %1180 }
 0x57f   : > { %v3256_v11 = vpop.permute.xlu1 %1186  ;;  %v3258_v52 = vpop.permute.xlu0 %1184 }
 0x583   : > { %v1256_v34 = vpop.permute.xlu1 %1255  ;;  %v1254_v31 = vpop.permute.xlu0 %1253 }
 0x584   : > { %v1302_v63 = vadd.f32 %v1256_v34, %v1205_v38  ;;  %v1301_v42 = vadd.f32 %v1254_v31, %v1204_v51  ;;  %v1114_v51 = vmul.f32 %v3246_v26, %v3091_v15  ;;  %v1113_v38 = vmul.f32 %v3246_v26, %v3094_v56 }
 0x586   : > { %v1319_v41 = vadd.f32 %v3265_v17, %v1302_v63  ;;  %v1318_v28 = vadd.f32 %v3265_v17, %v1301_v42  ;;  %v1116_v42 = vmul.f32 %v3246_v26, %v3101_v61  ;;  %v1211_v46 = vadd.f32 %v1171_v10, %v1114_v51 }
 0x587   : > { %v1260_v53 = vpop.permute.xlu1 %1259  ;;  %v1258_v59 = vpop.permute.xlu0 %1257  ;;  %v1210_v32 = vadd.f32 %v1169_v18, %v1113_v38 }
 0x588   : > { %v1304_v2 = vadd.f32 %v1260_v53, %v1207_v0  ;;  %v1303_v1 = vadd.f32 %v1258_v59, %v1206_v57  ;;  %1336 = vst.msk [vmem:[#allocation2 + $0x8] sm:$0xff] %vm1334_vm12, %v1319_v41  ;;  %1335 = vst.msk [vmem:[#allocation2] sm:$0xff] %vm1334_vm12, %v1318_v28  ;;  %v1115_v57 = vmul.f32 %v3246_v26, %v3104_v8 }
 0x589   : > { %v1118_v53 = vmul.f32 %v3246_v26, %v3111_v6  ;;  %v1117_v59 = vmul.f32 %v3246_v26, %v3114_v49  ;;  %v1213_v10 = vadd.f32 %v1175_v22, %v1116_v42 }
 0x58a   : > { %v1321_v12 = vadd.f32 %v3265_v17, %v1304_v2  ;;  %v1320_v9 = vadd.f32 %v3265_v17, %v1303_v1  ;;  %v1212_v18 = vadd.f32 %v1173_v23, %v1115_v57 }
 0x58b   : > { %v1264_v34 = vpop.permute.xlu1 %1263  ;;  %v1262_v31 = vpop.permute.xlu0 %1261  ;;  %v1215_v22 = vadd.f32 %v3241_v24, %v1118_v53  ;;  %v1214_v23 = vadd.f32 %v3243_v33, %v1117_v59  ;;  %v1121_v24 = vmul.f32 %v3246_v26, %v3134_v50 }
 0x58c   : > { %v1306_v0 = vadd.f32 %v1264_v34, %v1209_v30  ;;  %v1305_v63 = vadd.f32 %v1262_v31, %v1208_v45  ;;  %1337 = vst.msk [vmem:[#allocation2 + $0x10] sm:$0xff] %vm1334_vm12, %v1320_v9  ;;  %1338 = vst.msk [vmem:[#allocation2 + $0x18] sm:$0xff] %vm1334_vm12, %v1321_v12  ;;  %v1120_v34 = vmul.f32 %v3246_v26, %v3121_v13 }
 0x58d   : > { %v1119_v31 = vmul.f32 %v3246_v26, %v3124_v16 }
 0x58e   : > { %v1323_v2 = vadd.f32 %v3265_v17, %v1306_v0  ;;  %v1322_v1 = vadd.f32 %v3265_v17, %v1305_v63  ;;  %v1217_v33 = vadd.f32 %v3248_v60, %v1120_v34 }
 0x58f   : > { %v1268_v58 = vpop.permute.xlu1 %1267  ;;  %v1266_v62 = vpop.permute.xlu0 %1265 }
 0x590   : > { %v1308_v41 = vadd.f32 %v1268_v58, %v1211_v46  ;;  %v1307_v28 = vadd.f32 %v1266_v62, %v1210_v32  ;;  %1339 = vst.msk [vmem:[#allocation2 + $0x20] sm:$0xff] %vm1334_vm12, %v1322_v1  ;;  %1340 = vst.msk [vmem:[#allocation2 + $0x28] sm:$0xff] %vm1334_vm12, %v1323_v2  ;;  %v1122_v2 = vmul.f32 %v3246_v26, %v3131_v19 }
 0x591   : > { %v1216_v1 = vadd.f32 %v3250_v14, %v1119_v31  ;;  %v1218_v26 = vadd.f32 %v3258_v52, %v1121_v24 }
 0x592   : > { %v1325_v51 = vadd.f32 %v3265_v17, %v1308_v41  ;;  %v1324_v38 = vadd.f32 %v3265_v17, %v1307_v28 }
 0x593   : > { %v1272_v30 = vpop.permute.xlu1 %1271  ;;  %v1270_v45 = vpop.permute.xlu0 %1269 }
 0x594   : > { %v1310_v12 = vadd.f32 %v1272_v30, %v1213_v10  ;;  %v1309_v9 = vadd.f32 %v1270_v45, %v1212_v18  ;;  %1341 = vst.msk [vmem:[#allocation2 + $0x30] sm:$0xff] %vm1334_vm12, %v1324_v38  ;;  %1342 = vst.msk [vmem:[#allocation2 + $0x38] sm:$0xff] %vm1334_vm12, %v1325_v51  ;;  %v1219_v10 = vadd.f32 %v3256_v11, %v1122_v2 }
 0x596   : > { %v1327_v0 = vadd.f32 %v3265_v17, %v1310_v12  ;;  %v1326_v63 = vadd.f32 %v3265_v17, %v1309_v9  ;;  %v1351_v9 = vstv %s2872_s9 }
 0x597   : > { %v1276_v42 = vpop.permute.xlu1 %1275  ;;  %v1274_v57 = vpop.permute.xlu0 %1273  ;;  %v1355_v52 = vmul.f32 %v1351_v9, %v3069_v40  ;;  %v1358_v2 = vmul.f32 %v1351_v9, %v3094_v56 }
 0x598   : > { %v1312_v46 = vadd.f32 %v1276_v42, %v1215_v22  ;;  %v1311_v32 = vadd.f32 %v1274_v57, %v1214_v23  ;;  %1343 = vst.msk [vmem:[#allocation2 + $0x40] sm:$0xff] %vm1334_vm12, %v1326_v63  ;;  %1344 = vst.msk [vmem:[#allocation2 + $0x48] sm:$0xff] %vm1334_vm12, %v1327_v0  ;;  %v1357_v0 = vmul.f32 %v1351_v9, %v3081_v44 }
 0x599   : > { %v1356_v63 = vmul.f32 %v1351_v9, %v3084_v54 }
 0x59a   : > { %v1329_v58 = vadd.f32 %v3265_v17, %v1312_v46  ;;  %v1328_v62 = vadd.f32 %v3265_v17, %v1311_v32  ;;  %v1359_v32 = vmul.f32 %v1351_v9, %v3091_v15 }
 0x59b   : > { %v1280_v41 = vpop.permute.xlu1 %1279  ;;  %v1278_v28 = vpop.permute.xlu0 %1277 }
 0x59c   : > { %v1314_v53 = vadd.f32 %v1280_v41, %v1217_v33  ;;  %v1313_v59 = vadd.f32 %v1278_v28, %v1216_v1  ;;  %1345 = vst.msk [vmem:[#allocation2 + $0x50] sm:$0xff] %vm1334_vm12, %v1328_v62  ;;  %1346 = vst.msk [vmem:[#allocation2 + $0x58] sm:$0xff] %vm1334_vm12, %v1329_v58  ;;  %v1361_v62 = vmul.f32 %v1351_v9, %v3101_v61 }
 0x59d   : > { %v1360_v41 = vmul.f32 %v1351_v9, %v3104_v8 }
 0x59e   : > { %v1331_v60 = vadd.f32 %v3265_v17, %v1314_v53  ;;  %v1330_v14 = vadd.f32 %v3265_v17, %v1313_v59 }
 0x59f   : > { %v1284_v18 = vpop.permute.xlu1 %1283  ;;  %v1282_v51 = vpop.permute.xlu0 %1281 }
 0x5a0   : > { %v1316_v38 = vadd.f32 %v1284_v18, %v1219_v10  ;;  %v1315_v30 = vadd.f32 %v1282_v51, %v1218_v26  ;;  %1347 = vst.msk [vmem:[#allocation2 + $0x60] sm:$0xff] %vm1334_vm12, %v1330_v14  ;;  %1348 = vst.msk [vmem:[#allocation2 + $0x68] sm:$0xff] %vm1334_vm12, %v1331_v60  ;;  %v1363_v26 = vmul.f32 %v1351_v9, %v3111_v6 }
 0x5a1   : > { %v1362_v60 = vmul.f32 %v1351_v9, %v3114_v49 }
 0x5a2   : > { %v1333_v45 = vadd.f32 %v3265_v17, %v1316_v38  ;;  %v1332_v12 = vadd.f32 %v3265_v17, %v1315_v30  ;;  %v1365_v30 = vmul.f32 %v1351_v9, %v3121_v13 }
 0x5a3   : > { %v1404_v11 = vpop.permute.xlu1 %1403  ;;  %v1402_v34 = vpop.permute.xlu0 %1401 }
 0x5a4   : > { %1349 = vst.msk [vmem:[#allocation2 + $0x70] sm:$0xff] %vm1334_vm12, %v1332_v12  ;;  %1350 = vst.msk [vmem:[#allocation2 + $0x78] sm:$0xff] %vm1334_vm12, %v1333_v45  ;;  %v1364_v45 = vmul.f32 %v1351_v9, %v3124_v16 }
 0x5a7   : > { %v1408_v31 = vpop.permute.xlu1 %1407  ;;  %v1406_v22 = vpop.permute.xlu0 %1405 }
 0x5a8   : > { %v1452_v23 = vadd.f32 %v1408_v31, %v1355_v52 }
 0x5ab   : > { %v1412_v42 = vpop.permute.xlu1 %1411  ;;  %v1410_v57 = vpop.permute.xlu0 %1409 }
 0x5ac   : > { %v1454_v46 = vadd.f32 %v1412_v42, %v1357_v0  ;;  %v1453_v17 = vadd.f32 %v1410_v57, %v1356_v63  ;;  %v1367_v63 = vmul.f32 %v1351_v9, %v3131_v19  ;;  %v1366_v42 = vmul.f32 %v1351_v9, %v3134_v50 }
 0x5ad   : > { %v1353_v57 = vmul.f32 %v1351_v9, %v3074_v7 }
 0x5af   : > { %v1416_v24 = vpop.permute.xlu1 %1415  ;;  %v1414_v33 = vpop.permute.xlu0 %1413 }
 0x5b0   : > { %v3335_v1 = vadd.f32 %v1416_v24, %v1359_v32  ;;  %v3337_v58 = vadd.f32 %v1414_v33, %v1358_v2  ;;  %v1352_v32 = vmul.f32 %v1351_v9, %v3066_v29 }
 0x5b3   : > { %v1420_v28 = vpop.permute.xlu1 %1419  ;;  %v1418_v53 = vpop.permute.xlu0 %1417 }
 0x5b4   : > { %v3341_v59 = vadd.f32 %v1420_v28, %v1361_v62  ;;  %v3343_v10 = vadd.f32 %v1418_v53, %v1360_v41  ;;  %v1450_v41 = vadd.f32 %v1404_v11, %v1353_v57  ;;  %v1449_v28 = vadd.f32 %v1402_v34, %v1352_v32 }
 0x5b5   : > { %v1354_v53 = vmul.f32 %v1351_v9, %v3062_v43 }
 0x5b7   : > { %v1424_v14 = vpop.permute.xlu1 %1423  ;;  %v1422_v18 = vpop.permute.xlu0 %1421 }
 0x5b8   : > { %v3347_v51 = vadd.f32 %v1424_v14, %v1363_v26  ;;  %v3349_v38 = vadd.f32 %v1422_v18, %v1362_v60  ;;  %v3367_v26 = vstv %s2892_s30 }
 0x5bb   : > { %v1428_v12 = vpop.permute.xlu1 %1427  ;;  %v1426_v52 = vpop.permute.xlu0 %1425 }
 0x5bc   : > { %v3353_v31 = vadd.f32 %v1428_v12, %v1365_v30  ;;  %v3355_v0 = vadd.f32 %v1426_v52, %v1364_v45  ;;  %v3370_v45 = vstv %s2884_s22  ;;  %v1451_v12 = vadd.f32 %v1406_v22, %v1354_v53 }
 0x5bd   : > { %v1678_v9 = vmul.f32 %v3370_v45, %v3066_v29  ;;  %v1679_v53 = vmul.f32 %v3370_v45, %v3074_v7 }
 0x5bf   : > { %v1432_v2 = vpop.permute.xlu1 %1431  ;;  %v1430_v24 = vpop.permute.xlu0 %1429 }
 0x5c0   : > { %v3361_v33 = vadd.f32 %v1432_v2, %v1367_v63  ;;  %v3363_v62 = vadd.f32 %v1430_v24, %v1366_v42 }
 0x5c3   : > { %v1501_v60 = vpop.permute.xlu1 %1500  ;;  %v1499_v14 = vpop.permute.xlu0 %1498 }
 0x5c4   : > { %v1547_v18 = vadd.f32 %v1501_v60, %v1450_v41  ;;  %v1546_v30 = vadd.f32 %v1499_v14, %v1449_v28  ;;  %v1680_v41 = vmul.f32 %v3370_v45, %v3062_v43 }
 0x5c6   : > { %v1564_v52 = vadd.f32 %v3367_v26, %v1547_v18  ;;  %v1563_v63 = vadd.f32 %v3367_v26, %v1546_v30 }
 0x5c7   : > { %v1505_v2 = vpop.permute.xlu1 %1504  ;;  %v1503_v42 = vpop.permute.xlu0 %1502 }
 0x5c8   : > { %v1549_v24 = vadd.f32 %v1505_v2, %v1452_v23  ;;  %v1548_v11 = vadd.f32 %v1503_v42, %v1451_v12  ;;  %1597 = vrot.lane.b32.xlu1 %v1564_v52, %s2520_s26  ;;  %1595 = vrot.lane.b32.xlu0 %v1563_v63, %s2520_s26  ;;  %v1682_v12 = vmul.f32 %v3370_v45, %v3084_v54 }
 0x5c9   : > { %v1681_v52 = vmul.f32 %v3370_v45, %v3069_v40 }
 0x5ca   : > { %v3379_v34 = vadd.f32 %v3367_v26, %v1549_v24  ;;  %v1565_v22 = vadd.f32 %v3367_v26, %v1548_v11 }
 0x5cb   : > { %v1509_v57 = vpop.permute.xlu1 %1508  ;;  %v1507_v32 = vpop.permute.xlu0 %1506 }
 0x5cc   : > { %v1551_v23 = vadd.f32 %v1509_v57, %v1454_v46  ;;  %v1550_v28 = vadd.f32 %v1507_v32, %v1453_v17  ;;  %1710 = vrot.lane.b32.xlu1 %v1678_v9, %s2518_s6  ;;  %1599 = vrot.lane.b32.xlu0 %v1565_v22, %s2520_s26  ;;  %v1683_v9 = vmul.f32 %v3370_v45, %v3081_v44 }
 0x5ce   : > { %v3389_v60 = vadd.f32 %v3367_v26, %v1551_v23  ;;  %v3392_v14 = vadd.f32 %v3367_v26, %v1550_v28  ;;  %v1685_v28 = vmul.f32 %v3370_v45, %v3091_v15 }
 0x5cf   : > { %v1513_v18 = vpop.permute.xlu1 %1512  ;;  %v1511_v30 = vpop.permute.xlu0 %1510 }
 0x5d0   : > { %v1553_v46 = vadd.f32 %v1513_v18, %v3335_v1  ;;  %v1552_v17 = vadd.f32 %v1511_v30, %v3337_v58  ;;  %1714 = vrot.lane.b32.xlu1 %v1680_v41, %s2518_s6  ;;  %1712 = vrot.lane.b32.xlu0 %v1679_v53, %s2518_s6  ;;  %v1684_v1 = vmul.f32 %v3370_v45, %v3094_v56 }
 0x5d2   : > { %v3403_v63 = vadd.f32 %v3367_v26, %v1553_v46  ;;  %v3406_v2 = vadd.f32 %v3367_v26, %v1552_v17  ;;  %v1687_v17 = vmul.f32 %v3370_v45, %v3101_v61 }
 0x5d3   : > { %v1517_v42 = vpop.permute.xlu1 %1516  ;;  %v1515_v24 = vpop.permute.xlu0 %1514 }
 0x5d4   : > { %v1555_v58 = vadd.f32 %v1517_v42, %v3341_v59  ;;  %v1554_v11 = vadd.f32 %v1515_v24, %v3343_v10  ;;  %1718 = vrot.lane.b32.xlu1 %v1682_v12, %s2518_s6  ;;  %1716 = vrot.lane.b32.xlu0 %v1681_v52, %s2518_s6  ;;  %v1686_v59 = vmul.f32 %v3370_v45, %v3104_v8 }
 0x5d6   : > { %v3417_v22 = vadd.f32 %v3367_v26, %v1555_v58  ;;  %v3420_v57 = vadd.f32 %v3367_v26, %v1554_v11  ;;  %v1690_v58 = vmul.f32 %v3370_v45, %v3124_v16  ;;  %v1689_v11 = vmul.f32 %v3370_v45, %v3111_v6 }
 0x5d7   : > { %v1521_v32 = vpop.permute.xlu1 %1520  ;;  %v1519_v41 = vpop.permute.xlu0 %1518 }
 0x5d8   : > { %v1557_v10 = vadd.f32 %v1521_v32, %v3347_v51  ;;  %v1556_v23 = vadd.f32 %v1519_v41, %v3349_v38  ;;  %1722 = vrot.lane.b32.xlu1 %v1684_v1, %s2518_s6  ;;  %1720 = vrot.lane.b32.xlu0 %v1683_v9, %s2518_s6  ;;  %v1688_v51 = vmul.f32 %v3370_v45, %v3114_v49  ;;  %v1774_v41 = vstv %s2886_s23 }
 0x5da   : > { %v3431_v53 = vadd.f32 %v3367_v26, %v1557_v10  ;;  %v3434_v18 = vadd.f32 %v3367_v26, %v1556_v23  ;;  %v1777_v10 = vmul.f32 %v1774_v41, %v3062_v43  ;;  %v1776_v23 = vmul.f32 %v1774_v41, %v3074_v7 }
 0x5db   : > { %v1525_v30 = vpop.permute.xlu1 %1524  ;;  %v1523_v12 = vpop.permute.xlu0 %1522 }
 0x5dc   : > { %v1559_v38 = vadd.f32 %v1525_v30, %v3353_v31  ;;  %v1558_v46 = vadd.f32 %v1523_v12, %v3355_v0  ;;  %1726 = vrot.lane.b32.xlu1 %v1686_v59, %s2518_s6  ;;  %1724 = vrot.lane.b32.xlu0 %v1685_v28, %s2518_s6  ;;  %v1775_v59 = vmul.f32 %v1774_v41, %v3066_v29 }
 0x5dd   : > { %v1779_v28 = vmul.f32 %v1774_v41, %v3084_v54  ;;  %v1778_v30 = vmul.f32 %v1774_v41, %v3069_v40  ;;  %v1780_v12 = vmul.f32 %v1774_v41, %v3081_v44 }
 0x5de   : > { %v1576_v52 = vadd.f32 %v3367_v26, %v1559_v38  ;;  %v1575_v42 = vadd.f32 %v3367_v26, %v1558_v46  ;;  %v1782_v38 = vmul.f32 %v1774_v41, %v3091_v15  ;;  %v1785_v46 = vmul.f32 %v1774_v41, %v3114_v49 }
 0x5df   : > { %v1529_v24 = vpop.permute.xlu1 %1528  ;;  %v1527_v1 = vpop.permute.xlu0 %1526 }
 0x5e0   : > { %v1561_v31 = vadd.f32 %v1529_v24, %v3361_v33  ;;  %v1560_v0 = vadd.f32 %v1527_v1, %v3363_v62  ;;  %1730 = vrot.lane.b32.xlu1 %v1688_v51, %s2518_s6  ;;  %1728 = vrot.lane.b32.xlu0 %v1687_v17, %s2518_s6  ;;  %v1692_v33 = vmul.f32 %v3370_v45, %v3134_v50 }
 0x5e1   : > { %v1691_v62 = vmul.f32 %v3370_v45, %v3121_v13  ;;  %v1783_v51 = vmul.f32 %v1774_v41, %v3104_v8  ;;  %v1784_v17 = vmul.f32 %v1774_v41, %v3101_v61  ;;  %v1787_v24 = vmul.f32 %v1774_v41, %v3124_v16 }
 0x5e2   : > { %v1578_v9 = vadd.f32 %v3367_v26, %v1561_v31  ;;  %v1577_v32 = vadd.f32 %v3367_v26, %v1560_v0  ;;  %v1693_v26 = vmul.f32 %v3370_v45, %v3131_v19  ;;  %v1781_v45 = vmul.f32 %v1774_v41, %v3094_v56 }
 0x5e3   : > { %v1786_v1 = vmul.f32 %v1774_v41, %v3111_v6  ;;  %v1788_v31 = vmul.f32 %v1774_v41, %v3121_v13  ;;  %v1790_v0 = vmul.f32 %v1774_v41, %v3131_v19 }
 0x5e4   : > { %1734 = vrot.lane.b32.xlu1 %v1690_v58, %s2518_s6  ;;  %1732 = vrot.lane.b32.xlu0 %v1689_v11, %s2518_s6  ;;  %v1789_v58 = vmul.f32 %v1774_v41, %v3134_v50 }
 0x5e8   : > { %1738 = vrot.lane.b32.xlu1 %v1692_v33, %s2518_s6  ;;  %1736 = vrot.lane.b32.xlu0 %v1691_v62, %s2518_s6  ;;  %v3530_v33 = vstv %s2880_s1  ;;  %s2521_s1 = smov 2  }
 0x5ec   : > { %1807 = vrot.lane.b32.xlu1 %v1775_v59, %s2519_s27  ;;  %1740 = vrot.lane.b32.xlu0 %v1693_v26, %s2518_s6  ;;  %v1661_v59 = vmul.f32 %v3530_v33, %v3066_v29  ;;  %v1665_v29 = vmul.f32 %v3530_v33, %v3084_v54  ;;  %v1666_v54 = vmul.f32 %v3530_v33, %v3081_v44 }
 0x5ed   : > { %v1668_v44 = vmul.f32 %v3530_v33, %v3091_v15  ;;  %v1670_v15 = vmul.f32 %v3530_v33, %v3101_v61  ;;  %v1672_v61 = vmul.f32 %v3530_v33, %v3111_v6  ;;  %v1675_v6 = vmul.f32 %v3530_v33, %v3134_v50 }
 0x5f0   : > { %1811 = vrot.lane.b32.xlu1 %v1777_v10, %s2519_s27  ;;  %1809 = vrot.lane.b32.xlu0 %v1776_v23, %s2519_s27 }
 0x5f4   : > { %1815 = vrot.lane.b32.xlu1 %v1779_v28, %s2519_s27  ;;  %1813 = vrot.lane.b32.xlu0 %v1778_v30, %s2519_s27  ;;  %v1663_v28 = vmul.f32 %v3530_v33, %v3062_v43  ;;  %v1662_v30 = vmul.f32 %v3530_v33, %v3074_v7 }
 0x5f8   : > { %1819 = vrot.lane.b32.xlu1 %v1781_v45, %s2519_s27  ;;  %1817 = vrot.lane.b32.xlu0 %v1780_v12, %s2519_s27  ;;  %v3547_v45 = vstv %s2896_s15  ;;  %s3645_s15 = smov 0  }
 0x5fc   : > { %1823 = vrot.lane.b32.xlu1 %v1783_v51, %s2519_s27  ;;  %1821 = vrot.lane.b32.xlu0 %v1782_v38, %s2519_s27 }
 0x600   : > { %1827 = vrot.lane.b32.xlu1 %v1785_v46, %s2519_s27  ;;  %1825 = vrot.lane.b32.xlu0 %v1784_v17, %s2519_s27 }
 0x604   : > { %1831 = vrot.lane.b32.xlu1 %v1787_v24, %s2519_s27  ;;  %1829 = vrot.lane.b32.xlu0 %v1786_v1, %s2519_s27  ;;  %v1664_v24 = vmul.f32 %v3530_v33, %v3069_v40 }
 0x608   : > { %1835 = vrot.lane.b32.xlu1 %v1789_v58, %s2519_s27  ;;  %1833 = vrot.lane.b32.xlu0 %v1788_v31, %s2519_s27 }
 0x60c   : > { %1601 = vrot.lane.b32.xlu1 %v3379_v34, %s2520_s26  ;;  %1837 = vrot.lane.b32.xlu0 %v1790_v0, %s2519_s27  ;;  %v1667_v0 = vmul.f32 %v3530_v33, %v3094_v56  ;;  %v1669_v56 = vmul.f32 %v3530_v33, %v3104_v8  ;;  %v1671_v8 = vmul.f32 %v3530_v33, %v3114_v49 }
 0x60d   : > { %v1673_v49 = vmul.f32 %v3530_v33, %v3124_v16 }
 0x610   : > { %1605 = vrot.lane.b32.xlu1 %v3389_v60, %s2520_s26  ;;  %1603 = vrot.lane.b32.xlu0 %v3392_v14, %s2520_s26 }
 0x614   : > { %1609 = vrot.lane.b32.xlu1 %v3403_v63, %s2520_s26  ;;  %1607 = vrot.lane.b32.xlu0 %v3406_v2, %s2520_s26 }
 0x618   : > { %1613 = vrot.lane.b32.xlu1 %v3417_v22, %s2520_s26  ;;  %1611 = vrot.lane.b32.xlu0 %v3420_v57, %s2520_s26 }
 0x61c   : > { %1617 = vrot.lane.b32.xlu1 %v3431_v53, %s2520_s26  ;;  %1615 = vrot.lane.b32.xlu0 %v3434_v18, %s2520_s26 }
 0x620   : > { %1621 = vrot.lane.b32.xlu1 %v1576_v52, %s2520_s26  ;;  %1619 = vrot.lane.b32.xlu0 %v1575_v42, %s2520_s26 }
 0x624   : > { %1625 = vrot.lane.b32.xlu1 %v1578_v9, %s2520_s26  ;;  %1623 = vrot.lane.b32.xlu0 %v1577_v32, %s2520_s26 }
 0x63a   : > { %v1598_v34 = vpop.permute.xlu1 %1597  ;;  %v1596_v60 = vpop.permute.xlu0 %1595 }
 0x63b   : > { %1645 = vst.msk [vmem:[#allocation2 + $0x8] sm:$0xff] %vm1643_vm13, %v1598_v34  ;;  %1644 = vst.msk [vmem:[#allocation2] sm:$0xff] %vm1643_vm13, %v1596_v60 }
 0x63e   : > { %v1711_v14 = vpop.permute.xlu1 %1710  ;;  %v1600_v63 = vpop.permute.xlu0 %1599 }
 0x63f   : > { %1646 = vst.msk [vmem:[#allocation2 + $0x10] sm:$0xff] %vm1643_vm13, %v1600_v63  ;;  %v1758_v23 = vadd.f32 %v1711_v14, %v1661_v59 }
 0x642   : > { %v1715_v2 = vpop.permute.xlu1 %1714  ;;  %v1713_v22 = vpop.permute.xlu0 %1712 }
 0x643   : > { %v1760_v46 = vadd.f32 %v1715_v2, %v1663_v28  ;;  %v1759_v17 = vadd.f32 %v1713_v22, %v1662_v30 }
 0x646   : > { %v1719_v57 = vpop.permute.xlu1 %1718  ;;  %v1717_v53 = vpop.permute.xlu0 %1716 }
 0x647   : > { %v1762_v34 = vadd.f32 %v1719_v57, %v1665_v29  ;;  %v1761_v60 = vadd.f32 %v1717_v53, %v1664_v24 }
 0x64a   : > { %v1723_v18 = vpop.permute.xlu1 %1722  ;;  %v1721_v52 = vpop.permute.xlu0 %1720 }
 0x64b   : > { %v1764_v57 = vadd.f32 %v1723_v18, %v1667_v0  ;;  %v1763_v53 = vadd.f32 %v1721_v52, %v1666_v54 }
 0x64e   : > { %v1727_v42 = vpop.permute.xlu1 %1726  ;;  %v1725_v11 = vpop.permute.xlu0 %1724 }
 0x64f   : > { %v1766_v18 = vadd.f32 %v1727_v42, %v1669_v56  ;;  %v1765_v52 = vadd.f32 %v1725_v11, %v1668_v44 }
 0x652   : > { %v3525_v9 = vpop.permute.xlu1 %1730  ;;  %v3527_v32 = vpop.permute.xlu0 %1728 }
 0x653   : > { %v1768_v42 = vadd.f32 %v3525_v9, %v1671_v8  ;;  %v1767_v11 = vadd.f32 %v3527_v32, %v1670_v15  ;;  %v1674_v9 = vmul.f32 %v3530_v33, %v3121_v13  ;;  %v1676_v13 = vmul.f32 %v3530_v33, %v3131_v19 }
 0x656   : > { %v3532_v62 = vpop.permute.xlu1 %1734  ;;  %v3534_v41 = vpop.permute.xlu0 %1732 }
 0x657   : > { %v1770_v16 = vadd.f32 %v3532_v62, %v1673_v49  ;;  %v1769_v32 = vadd.f32 %v3534_v41, %v1672_v61 }
 0x65a   : > { %v3538_v26 = vpop.permute.xlu1 %1738  ;;  %v3540_v10 = vpop.permute.xlu0 %1736 }
 0x65b   : > { %v1772_v50 = vadd.f32 %v3538_v26, %v1675_v6  ;;  %v1771_v41 = vadd.f32 %v3540_v10, %v1674_v9 }
 0x65e   : > { %v1808_v12 = vpop.permute.xlu1 %1807  ;;  %v3549_v51 = vpop.permute.xlu0 %1740 }
 0x65f   : > { %v1855_v38 = vadd.f32 %v1808_v12, %v1758_v23 }
 0x661   : > { %v1872_v1 = vadd.f32 %v3547_v45, %v1855_v38 }
 0x662   : > { %v1812_v43 = vpop.permute.xlu1 %1811  ;;  %v1810_v58 = vpop.permute.xlu0 %1809 }
 0x663   : > { %v1857_v31 = vadd.f32 %v1812_v43, %v1760_v46  ;;  %v1856_v7 = vadd.f32 %v1810_v58, %v1759_v17  ;;  %1904 = vrot.lane.b32.xlu0 %v1872_v1, %s2521_s1 }
 0x665   : > { %v1874_v14 = vadd.f32 %v3547_v45, %v1857_v31  ;;  %v1873_v40 = vadd.f32 %v3547_v45, %v1856_v7 }
 0x666   : > { %v1816_v63 = vpop.permute.xlu1 %1815  ;;  %v1814_v2 = vpop.permute.xlu0 %1813 }
 0x667   : > { %v1859_v22 = vadd.f32 %v1816_v63, %v1762_v34  ;;  %v1858_v59 = vadd.f32 %v1814_v2, %v1761_v60  ;;  %1908 = vrot.lane.b32.xlu0 %v1874_v14, %s2521_s1  ;;  %1906 = vrot.lane.b32.xlu1 %v1873_v40, %s2521_s1 }
 0x669   : > { %v1876_v23 = vadd.f32 %v3547_v45, %v1859_v22  ;;  %v1875_v28 = vadd.f32 %v3547_v45, %v1858_v59  ;;  %v2522_v22 = vmov 1e+30  }
 0x66a   : > { %v1820_v30 = vpop.permute.xlu1 %1819  ;;  %v1818_v12 = vpop.permute.xlu0 %1817  ;;  %1969 = vst [vmem:[#allocation3] sm:$0xff] %v2522_v22  ;;  %1970 = vst [vmem:[#allocation3 + $0x8] sm:$0xff] %v2522_v22 }
 0x66b   : > { %v1861_v38 = vadd.f32 %v1820_v30, %v1764_v57  ;;  %v1860_v29 = vadd.f32 %v1818_v12, %v1763_v53  ;;  %1912 = vrot.lane.b32.xlu0 %v1876_v23, %s2521_s1  ;;  %1910 = vrot.lane.b32.xlu1 %v1875_v28, %s2521_s1  ;;  %1971 = vst [vmem:[#allocation3 + $0x10] sm:$0xff] %v2522_v22 }
 0x66c   : > { %v1773_v30 = vadd.f32 %v3549_v51, %v1676_v13 }
 0x66d   : > { %v1878_v46 = vadd.f32 %v3547_v45, %v1861_v38  ;;  %v1877_v17 = vadd.f32 %v3547_v45, %v1860_v29 }
 0x66e   : > { %v1824_v24 = vpop.permute.xlu1 %1823  ;;  %v1822_v1 = vpop.permute.xlu0 %1821 }
 0x66f   : > { %v1863_v43 = vadd.f32 %v1824_v24, %v1766_v18  ;;  %v1862_v58 = vadd.f32 %v1822_v1, %v1765_v52  ;;  %1916 = vrot.lane.b32.xlu0 %v1878_v46, %s2521_s1  ;;  %1914 = vrot.lane.b32.xlu1 %v1877_v17, %s2521_s1 }
 0x671   : > { %v1880_v31 = vadd.f32 %v3547_v45, %v1863_v43  ;;  %v1879_v7 = vadd.f32 %v3547_v45, %v1862_v58 }
 0x672   : > { %v1828_v0 = vpop.permute.xlu1 %1827  ;;  %v1826_v54 = vpop.permute.xlu0 %1825 }
 0x673   : > { %v1865_v34 = vadd.f32 %v1828_v0, %v1768_v42  ;;  %v1864_v60 = vadd.f32 %v1826_v54, %v1767_v11  ;;  %1920 = vrot.lane.b32.xlu0 %v1880_v31, %s2521_s1  ;;  %1918 = vrot.lane.b32.xlu1 %v1879_v7, %s2521_s1 }
 0x675   : > { %v1882_v14 = vadd.f32 %v3547_v45, %v1865_v34  ;;  %v1881_v40 = vadd.f32 %v3547_v45, %v1864_v60 }
 0x676   : > { %v1832_v63 = vpop.permute.xlu1 %1831  ;;  %v1830_v2 = vpop.permute.xlu0 %1829 }
 0x677   : > { %v1867_v59 = vadd.f32 %v1832_v63, %v1770_v16  ;;  %v1866_v62 = vadd.f32 %v1830_v2, %v1769_v32  ;;  %1924 = vrot.lane.b32.xlu0 %v1882_v14, %s2521_s1  ;;  %1922 = vrot.lane.b32.xlu1 %v1881_v40, %s2521_s1 }
 0x679   : > { %v1884_v56 = vadd.f32 %v3547_v45, %v1867_v59  ;;  %v1883_v44 = vadd.f32 %v3547_v45, %v1866_v62 }
 0x67a   : > { %v1836_v57 = vpop.permute.xlu1 %1835  ;;  %v1834_v53 = vpop.permute.xlu0 %1833 }
 0x67b   : > { %v1869_v23 = vadd.f32 %v1836_v57, %v1772_v50  ;;  %v1868_v28 = vadd.f32 %v1834_v53, %v1771_v41  ;;  %1928 = vrot.lane.b32.xlu0 %v1884_v56, %s2521_s1  ;;  %1926 = vrot.lane.b32.xlu1 %v1883_v44, %s2521_s1 }
 0x67d   : > { %v1886_v19 = vadd.f32 %v3547_v45, %v1869_v23  ;;  %v1885_v33 = vadd.f32 %v3547_v45, %v1868_v28 }
 0x67e   : > { %v1602_v26 = vpop.permute.xlu1 %1601  ;;  %v1838_v10 = vpop.permute.xlu0 %1837 }
 0x67f   : > { %1647 = vst.msk [vmem:[#allocation2 + $0x18] sm:$0xff] %vm1643_vm13, %v1602_v26  ;;  %v1870_v12 = vadd.f32 %v1838_v10, %v1773_v30  ;;  %1932 = vrot.lane.b32.xlu0 %v1886_v19, %s2521_s1  ;;  %1930 = vrot.lane.b32.xlu1 %v1885_v33, %s2521_s1 }
 0x681   : > { %v1887_v38 = vadd.f32 %v3547_v45, %v1870_v12 }
 0x682   : > { %v1606_v29 = vpop.permute.xlu1 %1605  ;;  %v1604_v8 = vpop.permute.xlu0 %1603 }
 0x683   : > { %1649 = vst.msk [vmem:[#allocation2 + $0x28] sm:$0xff] %vm1643_vm13, %v1606_v29  ;;  %1648 = vst.msk [vmem:[#allocation2 + $0x20] sm:$0xff] %vm1643_vm13, %v1604_v8  ;;  %1934 = vrot.lane.b32.xlu1 %v1887_v38, %s2521_s1 }
 0x686   : > { %v1610_v51 = vpop.permute.xlu1 %1609  ;;  %v1608_v15 = vpop.permute.xlu0 %1607 }
 0x687   : > { %1651 = vst.msk [vmem:[#allocation2 + $0x38] sm:$0xff] %vm1643_vm13, %v1610_v51  ;;  %1650 = vst.msk [vmem:[#allocation2 + $0x30] sm:$0xff] %vm1643_vm13, %v1608_v15 }
 0x68a   : > { %v1614_v18 = vpop.permute.xlu1 %1613  ;;  %v1612_v52 = vpop.permute.xlu0 %1611 }
 0x68b   : > { %1653 = vst.msk [vmem:[#allocation2 + $0x48] sm:$0xff] %vm1643_vm13, %v1614_v18  ;;  %1652 = vst.msk [vmem:[#allocation2 + $0x40] sm:$0xff] %vm1643_vm13, %v1612_v52 }
 0x68e   : > { %v1618_v45 = vpop.permute.xlu1 %1617  ;;  %v1616_v46 = vpop.permute.xlu0 %1615 }
 0x68f   : > { %1655 = vst.msk [vmem:[#allocation2 + $0x58] sm:$0xff] %vm1643_vm13, %v1618_v45  ;;  %1654 = vst.msk [vmem:[#allocation2 + $0x50] sm:$0xff] %vm1643_vm13, %v1616_v46 }
 0x692   : > { %v1622_v17 = vpop.permute.xlu1 %1621  ;;  %v1620_v24 = vpop.permute.xlu0 %1619 }
 0x693   : > { %1657 = vst.msk [vmem:[#allocation2 + $0x68] sm:$0xff] %vm1643_vm13, %v1622_v17  ;;  %1656 = vst.msk [vmem:[#allocation2 + $0x60] sm:$0xff] %vm1643_vm13, %v1620_v24 }
 0x696   : > { %v1626_v1 = vpop.permute.xlu1 %1625  ;;  %v1624_v43 = vpop.permute.xlu0 %1623 }
 0x697   : > { %1659 = vst.msk [vmem:[#allocation2 + $0x78] sm:$0xff] %vm1643_vm13, %v1626_v1  ;;  %1658 = vst.msk [vmem:[#allocation2 + $0x70] sm:$0xff] %vm1643_vm13, %v1624_v43 }
 0x6d5   : > { %v1905_v58 = vpop.permute.xlu0 %1904 }
 0x6d6   : > { %1953 = vst.msk [vmem:[#allocation2] sm:$0xff] %vm1952_vm14, %v1905_v58 }
 0x6d9   : > { %v1907_v49 = vpop.permute.xlu1 %1906  ;;  %v1909_v61 = vpop.permute.xlu0 %1908 }
 0x6da   : > { %1954 = vst.msk [vmem:[#allocation2 + $0x8] sm:$0xff] %vm1952_vm14, %v1907_v49  ;;  %1955 = vst.msk [vmem:[#allocation2 + $0x10] sm:$0xff] %vm1952_vm14, %v1909_v61 }
 0x6dd   : > { %v1911_v42 = vpop.permute.xlu1 %1910  ;;  %v1913_v11 = vpop.permute.xlu0 %1912 }
 0x6de   : > { %1956 = vst.msk [vmem:[#allocation2 + $0x18] sm:$0xff] %vm1952_vm14, %v1911_v42  ;;  %1957 = vst.msk [vmem:[#allocation2 + $0x20] sm:$0xff] %vm1952_vm14, %v1913_v11 }
 0x6e1   : > { %v1915_v31 = vpop.permute.xlu1 %1914  ;;  %v1917_v7 = vpop.permute.xlu0 %1916 }
 0x6e2   : > { %1958 = vst.msk [vmem:[#allocation2 + $0x28] sm:$0xff] %vm1952_vm14, %v1915_v31  ;;  %1959 = vst.msk [vmem:[#allocation2 + $0x30] sm:$0xff] %vm1952_vm14, %v1917_v7 }
 0x6e5   : > { %v1919_v0 = vpop.permute.xlu1 %1918  ;;  %v1921_v54 = vpop.permute.xlu0 %1920 }
 0x6e6   : > { %1960 = vst.msk [vmem:[#allocation2 + $0x38] sm:$0xff] %vm1952_vm14, %v1919_v0  ;;  %1961 = vst.msk [vmem:[#allocation2 + $0x40] sm:$0xff] %vm1952_vm14, %v1921_v54 }
 0x6e9   : > { %v1923_v34 = vpop.permute.xlu1 %1922  ;;  %v1925_v60 = vpop.permute.xlu0 %1924 }
 0x6ea   : > { %1962 = vst.msk [vmem:[#allocation2 + $0x48] sm:$0xff] %vm1952_vm14, %v1923_v34  ;;  %1963 = vst.msk [vmem:[#allocation2 + $0x50] sm:$0xff] %vm1952_vm14, %v1925_v60 }
 0x6ed   : > { %v1927_v16 = vpop.permute.xlu1 %1926  ;;  %v1929_v6 = vpop.permute.xlu0 %1928 }
 0x6ee   : > { %1964 = vst.msk [vmem:[#allocation2 + $0x58] sm:$0xff] %vm1952_vm14, %v1927_v16  ;;  %1965 = vst.msk [vmem:[#allocation2 + $0x60] sm:$0xff] %vm1952_vm14, %v1929_v6 }
 0x6f1   : > { %v1931_v9 = vpop.permute.xlu1 %1930  ;;  %v1933_v32 = vpop.permute.xlu0 %1932 }
 0x6f2   : > { %1966 = vst.msk [vmem:[#allocation2 + $0x68] sm:$0xff] %vm1952_vm14, %v1931_v9  ;;  %1967 = vst.msk [vmem:[#allocation2 + $0x70] sm:$0xff] %vm1952_vm14, %v1933_v32 }
 0x6f5   : > { %v1935_v14 = vpop.permute.xlu1 %1934 }
 0x6f6   : > { %1968 = vst.msk [vmem:[#allocation2 + $0x78] sm:$0xff] %vm1952_vm14, %v1935_v14 }
 0x6f7 LB: >> { %s1978_s12 = scalar_lea.vmem [#allocation2], %s2502_s15  ;;  %s2523_s8 = smov 127   ;;  %v2018_v52 = vld [vmem:[#allocation3] sm:$0xff]  ;;  %v2019_v46 = vld [vmem:[#allocation3 + $0x8] sm:$0xff]  ;;  %v2020_v17 = vld [vmem:[#allocation3 + $0x10] sm:$0xff]  ;;  %s2502_s15 = sphi %s3645_s15, %s1977_s15  }
 0x6f8   : >> { %s2524_s20 = smov 126   ;;  %s1977_s15 = sadd.s32 1, %s2502_s15  }
 0x6f9   : >> { %p1974_p12 = scmp.ge.s32.totalorder %s1977_s15, 128  }
 0x6fa   : > { %v2053_v31 = vsub.s32 (%p1974_p12), 3, %v2905_v48  ;;  %s2525_s22 = smov (%p1974_p12), 120   ;;  %s2142_s23 = smul.f32 (%p1974_p12), %s2860_s14, %s2856_s10 }
 0x6fc   : > { %v2054_v60 = vrot.slane (%p1974_p12), %v2916_v55, %v2053_v31 }
 0x6fd   : >> { %v1979_v40 = vld [vmem:[%s1978_s12] sm:$0x1] }
 0x6fe   : >> { %1987 = vrot.lane.b32.xlu0 %v1979_v40, %s2523_s8  ;;  %2280 = vpush %v1979_v40 }
 0x702   : >> { %1995 = vrot.lane.b32.xlu0 %v1979_v40, %s2524_s20 }
 0x72f   : >> { %s2281_s28 = spop %2280 }
 0x730   : >> { %v1982_v22 = vstv %s2281_s28 }
 0x731   : >> { %v1984_v59 = vsub.f32 %v2937_v27, %v1982_v22  ;;  %v1985_v62 = vsub.f32 %v2944_v39, %v1982_v22  ;;  %v1986_v13 = vsub.f32 %v2950_v35, %v1982_v22 }
 0x733   : >> { %v2003_v57 = vmul.f32 %v1984_v59, %v1984_v59  ;;  %v2004_v53 = vmul.f32 %v1985_v62, %v1985_v62  ;;  %v2005_v28 = vmul.f32 %v1986_v13, %v1986_v13 }
 0x770   : >> { %v1988_v63 = vpop.permute.xlu0 %1987 }
 0x771   : >> { %2282 = vpush %v1988_v63 }
 0x774   : >> { %v1996_v2 = vpop.permute.xlu0 %1995 }
 0x775   : >> { %2284 = vpush %v1996_v2 }
 0x7a2   : >> { %s2283_s9 = spop %2282 }
 0x7a3   : >> { %v1990_v50 = vstv %s2283_s9 }
 0x7a4   : >> { %v1992_v41 = vsub.f32 %v2957_v47, %v1990_v50  ;;  %v1993_v56 = vsub.f32 %v2952_v3, %v1990_v50  ;;  %v1994_v44 = vsub.f32 %v2966_v4, %v1990_v50 }
 0x7a6   : >> { %v2006_v23 = vmul.f32 %v1992_v41, %v1992_v41  ;;  %s2285_s13 = spop %2284  ;;  %v2007_v30 = vmul.f32 %v1993_v56, %v1993_v56  ;;  %v2008_v19 = vmul.f32 %v1994_v44, %v1994_v44 }
 0x7a7   : >> { %v1998_v33 = vstv %s2285_s13 }
 0x7a8   : >> { %v2000_v26 = vsub.f32 %v2983_v20, %v1998_v33  ;;  %v2001_v10 = vsub.f32 %v2970_v21, %v1998_v33  ;;  %v2002_v12 = vsub.f32 %v2985_v36, %v1998_v33  ;;  %v2009_v38 = vadd.f32 %v2006_v23, %v2003_v57 }
 0x7a9   : >> { %v2010_v8 = vadd.f32 %v2007_v30, %v2004_v53  ;;  %v2011_v51 = vadd.f32 %v2008_v19, %v2005_v28 }
 0x7aa   : >> { %v2012_v29 = vmul.f32 %v2000_v26, %v2000_v26  ;;  %v2013_v15 = vmul.f32 %v2001_v10, %v2001_v10  ;;  %v2014_v18 = vmul.f32 %v2002_v12, %v2002_v12 }
 0x7ab   : > { %1976 = sbr.rel (!%p1974_p12) target bundleno = 1783 (0x6f7), region = 98 }
 0x7ac   : >> { %v2015_v45 = vadd.f32 %v2012_v29, %v2009_v38  ;;  %v2016_v24 = vadd.f32 %v2013_v15, %v2010_v8  ;;  %v2017_v1 = vadd.f32 %v2014_v18, %v2011_v51 }
 0x7ae   : >> { %v2021_v43 = vmin.f32 %v2018_v52, %v2015_v45  ;;  %v2022_v58 = vmin.f32 %v2019_v46, %v2016_v24  ;;  %v2023_v49 = vmin.f32 %v2020_v17, %v2017_v1 }
 0x7b0   : >> { %2024 = vst [vmem:[#allocation3] sm:$0xff] %v2021_v43  ;;  %2025 = vst [vmem:[#allocation3 + $0x8] sm:$0xff] %v2022_v58 }
 0x7b1   : >> { %2026 = vst [vmem:[#allocation3 + $0x10] sm:$0xff] %v2023_v49 }
 0x7b7   : > { %v2027_v61 = vld [vmem:[#allocation3] sm:$0xff]  ;;  %v2028_v42 = vld [vmem:[#allocation3 + $0x8] sm:$0xff] }
 0x7b8   : > { %v2029_v11 = vld [vmem:[#allocation3 + $0x10] sm:$0xff]  ;;  %2401 = vrsqrt.f32 %v2027_v61  ;;  %vm2032_vm15 = vcmp.eq.f32.partialorder %v2027_v61, inf  ;;  %vm2034_vm3 = vcmp.eq.f32.partialorder %v2027_v61, 0.0  ;;  %v2035_v0 = vand.u32 2147483648, %v2027_v61 }
 0x7b9   : > { %2403 = vrsqrt.f32 %v2028_v42  ;;  %vm2039_vm4 = vcmp.eq.f32.partialorder %v2028_v42, inf  ;;  %v2042_v16 = vand.u32 2147483648, %v2028_v42  ;;  %vm2041_vm5 = vcmp.eq.f32.partialorder %v2028_v42, 0.0 }
 0x7ba   : > { %2405 = vrsqrt.f32 %v2029_v11  ;;  %vm2046_vm6 = vcmp.eq.f32.partialorder %v2029_v11, inf  ;;  %v2049_v27 = vand.u32 2147483648, %v2029_v11  ;;  %vm2048_vm7 = vcmp.eq.f32.partialorder %v2029_v11, 0.0 }
 0x7bb   : > { %2407 = vlog2.f32 %v2990_v5 }
 0x7bc   : > { %2409 = vlog2.f32 %v2995_v37 }
 0x7bd   : > { %2411 = vlog2.f32 %v2979_v25 }
 0x7c2   : > { %v2402_v7 = vpop.eup %2401 }
 0x7c3   : > { %v2404_v54 = vpop.eup %2403  ;;  %v2031_v34 = vmul.f32 %v2402_v7, %v2027_v61 }
 0x7c4   : > { %v2406_v6 = vpop.eup %2405  ;;  %v2038_v9 = vmul.f32 %v2404_v54, %v2028_v42 }
 0x7c5   : > { %v2033_v39 = vsel %vm2032_vm15, %v2027_v61, %v2031_v34  ;;  %v2045_v35 = vmul.f32 %v2406_v6, %v2029_v11  ;;  %v2408_v55 = vpop.eup %2407 }
 0x7c6   : > { %v2036_v3 = vsel %vm2034_vm3, %v2035_v0, %v2033_v39  ;;  %v2040_v48 = vsel %vm2039_vm4, %v2028_v42, %v2038_v9  ;;  %v2410_v14 = vpop.eup %2409  ;;  %v2071_v40 = vmul.f32 0.6931472, %v2408_v55 }
 0x7c7   : > { %v2055_v47 = vmul.f32 %v2054_v60, %v2036_v3  ;;  %v2043_v4 = vsel %vm2041_vm5, %v2042_v16, %v2040_v48  ;;  %v2047_v21 = vsel %vm2046_vm6, %v2029_v11, %v2045_v35  ;;  %v2412_v63 = vpop.eup %2411  ;;  %v2075_v2 = vmul.f32 0.6931472, %v2410_v14 }
 0x7c8   : > { %v2050_v20 = vsel %vm2048_vm7, %v2049_v27, %v2047_v21  ;;  %v2056_v36 = vmul.f32 %v2054_v60, %v2043_v4  ;;  %v2076_v62 = vmul.f32 0.01, %v2071_v40  ;;  %v2073_v13 = vmul.f32 0.6931472, %v2412_v63 }
 0x7c9   : > { %2058 = vadd.xlane.f32.xlu0 %v2055_v47  ;;  %v2057_v32 = vmul.f32 %v2054_v60, %v2050_v20  ;;  %v2078_v53 = vmul.f32 0.01, %v2075_v2  ;;  %v2143_v21 = vstv %s2142_s23 }
 0x7ca   : > { %v2077_v33 = vmul.f32 0.01, %v2073_v13 }
 0x7cb   : > { %2062 = vadd.xlane.f32.xlu1 %v2057_v32 }
 0x7cd   : > { %2060 = vadd.xlane.f32.xlu0 %v2056_v36 }
 0x856   : > { %v2059_v22 = vpop.xlane.xlu0 %2058 }
 0x857   : > { %v2064_v59 = vmul.f32 0.015625, %v2059_v22 }
 0x858   : > { %v2063_v50 = vpop.xlane.xlu1 %2062 }
 0x859   : > { %v2067_v41 = vmul.f32 %v2064_v59, %v2990_v5  ;;  %v2082_v44 = vsel %vm862_vm1, %v2064_v59, 0.0  ;;  %v2066_v57 = vmul.f32 0.015625, %v2063_v50 }
 0x85a   : > { %2088 = vrot.lane.b32.xlu1 %v2082_v44, %s2525_s22  ;;  %v2061_v23 = vpop.xlane.xlu0 %2060 }
 0x85b   : > { %v2065_v28 = vmul.f32 0.015625, %v2061_v23  ;;  %v2069_v30 = vmul.f32 %v2066_v57, %v2995_v37  ;;  %v2079_v19 = vsub.f32 %v2067_v41, %v2076_v62 }
 0x85d   : > { %v2068_v26 = vmul.f32 %v2065_v28, %v2979_v25  ;;  %v2112_v10 = vsel %vm862_vm1, %v2079_v19, 0.0  ;;  %v2083_v5 = vsel %vm863_vm0, %v2065_v28, 0.0  ;;  %v2081_v38 = vsub.f32 %v2069_v30, %v2078_v53 }
 0x85e   : > { %2118 = vrot.lane.b32.xlu1 %v2112_v10, %s2525_s22  ;;  %2090 = vrot.lane.b32.xlu0 %v2083_v5, %s2525_s22  ;;  %v2084_v25 = vsel %vm864_vm2, %v2066_v57, 0.0  ;;  %vm2148_vm1 = vcmask 8200  }
 0x85f   : > { %v2080_v29 = vsub.f32 %v2068_v26, %v2077_v33  ;;  %v2114_v51 = vsel %vm864_vm2, %v2081_v38, 0.0 }
 0x861   : > { %v2113_v37 = vsel %vm863_vm0, %v2080_v29, 0.0  ;;  %vm2145_vm0 = vcmask 0  }
 0x862   : > { %2120 = vrot.lane.b32.xlu1 %v2113_v37, %s2525_s22  ;;  %2122 = vrot.lane.b32.xlu0 %v2114_v51, %s2525_s22 }
 0x866   : > { %2092 = vrot.lane.b32.xlu1 %v2084_v25, %s2525_s22 }
 0x8cc   : > { %v2089_v15 = vpop.permute.xlu1 %2088 }
 0x8cd   : > { %v2097_v49 = vsel %vm1334_vm12, %v2089_v15, 0.0 }
 0x8d0   : > { %v2119_v18 = vpop.permute.xlu1 %2118  ;;  %v2091_v52 = vpop.permute.xlu0 %2090 }
 0x8d1   : > { %v2127_v17 = vsel %vm1334_vm12, %v2119_v18, 0.0  ;;  %v2098_v24 = vsel %vm1334_vm12, %v2091_v52, 0.0 }
 0x8d2   : > { %v2099_v61 = vadd.f32 %v2098_v24, %v2097_v49 }
 0x8d4   : > { %v2121_v45 = vpop.permute.xlu1 %2120  ;;  %v2123_v46 = vpop.permute.xlu0 %2122 }
 0x8d5   : > { %v2128_v1 = vsel %vm1334_vm12, %v2121_v45, 0.0  ;;  %v2130_v43 = vsel %vm1334_vm12, %v2123_v46, 0.0 }
 0x8d6   : > { %v2129_v58 = vadd.f32 %v2128_v1, %v2127_v17 }
 0x8d8   : > { %v2093_v42 = vpop.permute.xlu1 %2092  ;;  %v2131_v11 = vadd.f32 %v2130_v43, %v2129_v58 }
 0x8d9   : > { %v2100_v31 = vsel %vm1334_vm12, %v2093_v42, 0.0 }
 0x8da   : > { %2132 = vadd.xlane.f32.xlu0 %v2131_v11  ;;  %v2101_v7 = vadd.f32 %v2100_v31, %v2099_v61 }
 0x8dc   : > { %2102 = vadd.xlane.f32.xlu1 %v2101_v7 }
 0x967   : > { %v2133_v0 = vpop.xlane.xlu0 %2132 }
 0x968   : > { %v2134_v54 = vrot.slane %v2133_v0, 4 }
 0x969   : > { %v2103_v34 = vpop.xlane.xlu1 %2102 }
 0x96a   : > { %v2135_v60 = vadd.f32 %v2134_v54, %v2133_v0  ;;  %v2104_v16 = vrot.slane %v2103_v34, 4 }
 0x96c   : > { %v2136_v6 = vrot.slane %v2135_v60, 2  ;;  %v2105_v9 = vadd.f32 %v2104_v16, %v2103_v34 }
 0x96e   : > { %v2137_v27 = vadd.f32 %v2136_v6, %v2135_v60  ;;  %v2106_v39 = vrot.slane %v2105_v9, 2 }
 0x970   : > { %v2107_v35 = vadd.f32 %v2106_v39, %v2105_v9  ;;  %v2138_v3 = vrot.slane %v2137_v27, 1 }
 0x972   : > { %v2108_v48 = vrot.slane %v2107_v35, 1  ;;  %v2139_v4 = vadd.f32 %v2138_v3, %v2137_v27 }
 0x974   : > { %v2109_v47 = vadd.f32 %v2108_v48, %v2107_v35 }
 0x976   : > { %2286 = vpush %v2109_v47 }
 0x977   : > { %2288 = vpush %v2139_v4 }
 0x9a7   : > { %s2287_s30 = spop %2286 }
 0x9a8   : > { %v2111_v20 = vstv %s2287_s30  ;;  %s2289_s3 = spop %2288 }
 0x9a9   : > { %v2144_v36 = vmul.f32 %v2143_v21, %v2111_v20  ;;  %v2141_v32 = vstv %s2289_s3 }
 0x9aa   : > { %v2147_v55 = vmul.f32 %v2143_v21, %v2141_v32 }
 0x9ab   : > { %2146 = vst.msk [vmem:[%s2999_s7] sm:$0x1] %vm2145_vm0, %v2144_v36 }
 0x9ac   : > { %2149 = vst.msk [vmem:[%s2999_s7] sm:$0x1] %vm2148_vm1, %v2147_v55 }
 0x9ad PF: > { %s2271_s17 = sshll.u32 %s2573_s19, 4  ;;  %s2163_s14 = sshll.u32 %s2999_s7, 4  ;;  %s2164_s14 = int_to_ptr.vmem [resolvable:$true] %s2163_s14 }
 0x9ae   : > { %s3697_s10 = scalar_lea.hbm %s3740_s4, %s2271_s17  ;;  %s3773_s5 = sand.u32 1, %s2490_s16  }
 0x9af   : > { %s2151_s11 = scalar_lea.sflag [#allocation5], %s3773_s5  ;;  %s2428_s29 = scalar_lea.vmem %s2164_s14, 16 }
 0x9b0   : > { %p2429_p13 = scmp.ne.s32.totalorder %s2164_s14, %s2428_s29  ;;  %s2526_s0 = smov [#allocation7]  }
 0x9b1   : > { %s2432_s6 = sshll.u32 %s2526_s0, 4  ;;  %s2433_s6 = int_to_ptr.vmem [resolvable:$false] %s2432_s6 }
 0x9b2   : > { %p2430_p0 = pnand %p2429_p13, %p2590_p5  ;;  %s2434_s27 = scalar_lea.vmem %s2433_s6, 32 }
 0x9b3   : > { %p2435_p2 = scmp.lt.s32.totalorder %s2164_s14, %s2433_s6  ;;  %p2436_p3 = scmp.lt.s32.totalorder %s2434_s27, %s2428_s29 }
 0x9b4   : > { %p2431_p1 = pneg %p2430_p0 }
 0x9b5   : > { %p2437_p4 = por %p2436_p3, %p2435_p2 }
 0x9b7   : > { %p2438_p7 = pnand %p2437_p4, %p2431_p1 }
 0x9b9   : > { %2441 = shalt.err (!%p2438_p7)
}
 0x9ba   : > { %s2442_s19 = scalar_lea.hbm %s3697_s10, 16  ;;  %s2446_s1 = scalar_lea.hbm %s3740_s4, 32 }
 0x9bb   : > { %p2443_p8 = scmp.ne.s32.totalorder %s3697_s10, %s2442_s19  ;;  %p2447_p10 = scmp.lt.u32.totalorder %s3697_s10, %s3740_s4 }
 0x9bc   : > { %p2448_p12 = scmp.lt.u32.totalorder %s2446_s1, %s2442_s19  ;;  %p2450_p0 = scmp.lt.u32.totalorder %s2442_s19, %s3697_s10 }
 0x9bd   : > { %p2444_p11 = pnand %p2443_p8, %p2590_p5 }
 0x9be   : > { %p2449_p13 = por %p2448_p12, %p2447_p10 }
 0x9bf   : > { %p2445_p9 = pneg %p2444_p11 }
 0x9c0   : > { %p2451_p1 = por %p2450_p0, %p2449_p13 }
 0x9c2   : > { %p2452_p2 = pnand %p2451_p1, %p2445_p9 }
 0x9c4   : > { %2455 = shalt.err (!%p2452_p2)
}
 0x9c5   : > { %2294 = dma.vmem_to_hbm [thread:$0]  (%p2590_p5), %s2164_s14, 16, %s3697_s10, %s2151_s11  }
 0x9c6 PF: > { %s3774_s8 = sld [smem:[#allocation10_spill]]  ;;  %p2306_p3 = scmp.ge.s32.totalorder %s2498_s18, 2 }
 0x9c8   : > { %p2301_p4 = pnand %p2306_p3, %p2594_p6 }
 0x9cc   : > { %s2175_s28 = sand.u32 1, %s3774_s8  }
 0x9cd   : > { %s2176_s9 = scalar_lea.sflag [#allocation5], %s2175_s28 }
 0x9ce   : > { %2481 = dma.done.wait (!%p2301_p4), %s2176_s9, 16  }
 0x9cf   : > { %2483 = vsyncadd (!%p2301_p4), %s2176_s9, 4294967280  ;;  %s3776_s18 = sld [smem:[#allocation12_spill]]  ;;  %s3777_s13 = sld [smem:[#allocation11_spill]] }
 0x9d0   : > { %s3778_s17 = sld [smem:[#allocation13_spill]]  ;;  %s3779_s15 = smov %s2490_s16 }
 0x9d5   : > { %p15_p7 = scmp.ge.s32.totalorder %s3776_s18, 4   ;;  %s3780_s16 = smov %s3777_s13 }
 0x9d7   :  { %17 = sbr.rel (!%p15_p7) target bundleno = 8 (0x8), region = 109 }
 0x9de   :  { %2180 = vsyncpa [#allocation5], 1 }
 0x9df   :  { %2182 = vsyncpa [#allocation5 + $0x1], 1 }
 0x9e0   :  { %2183 = vsyncpa [#allocation6], 1 }
 0x9e1   :  { %2185 = vsyncpa [#allocation6 + $0x1], 1 }

</bundles_post_ra>
